<compile_context>
chip_gen: v7x
topology: tpu7x:2x2x1
jax: 0.10.0
libtpu: 0.0.40
codegen_flags: <defaults>
</compile_context>

<pallas_src>
import jax
import jax.numpy as jnp
from jax.experimental import pallas as pl
from jax.experimental.pallas import tpu as pltpu


def _round_up(x, m):
    return ((x + m - 1) // m) * m


def _ksigmoid(x):
    # Exact identity sigmoid(x) = 0.5*tanh(x/2)+0.5; tanh goes to the EUP slot,
    # avoiding a long-latency divide inside the latency-bound recurrence.
    return 0.5 * jnp.tanh(0.5 * x) + 0.5


def _siamese_bilstm_kernel(x_ref, wih_ref, bias_ref, whh_ref, w1_ref, b1_ref,
                           w2_ref, b2_ref, out_ref, xg_ref, hcat_ref):
    TB = x_ref.shape[0]
    H2 = whh_ref.shape[0]            # 2*H : [h_fwd | h_bwd] side by side
    G8 = whh_ref.shape[1]            # 8*H : interleaved gates, both directions
    T = xg_ref.shape[1] // G8

    # ---- Hoisted input projection (all T steps, both directions, bias folded).
    # Column block s of xg holds exactly the gate contributions used at loop
    # step s: [i_f(s), i_b(T-1-s), f_f(s), f_b(T-1-s), g_f, g_b, o_f, o_b];
    # time reversal + gate interleaving are baked into wih_big by the wrapper.
    xg_ref[...] = (
        jnp.dot(x_ref[...], wih_ref[...], preferred_element_type=jnp.float32)
        + bias_ref[...])

    whh = whh_ref[...]               # (2H, 8H) block-diagonal recurrent weight

    # ---- Interleaved fwd/bwd recurrence; h/c hold both directions together so
    # every elementwise op is 2H lanes wide and shuffle-free.
    h = jnp.zeros((TB, H2), jnp.float32)
    c = jnp.zeros((TB, H2), jnp.float32)
    # T is a small compile-time constant -> static unroll keeps all offsets
    # static.  TODO(synk): switch to lax.fori_loop + pl.ds if input_len grows.
    for s in range(T):
        gates = xg_ref[:, s * G8:(s + 1) * G8] + jnp.dot(
            h, whh, preferred_element_type=jnp.float32)        # (TB, 8H)
        i_g = _ksigmoid(gates[:, 0 * H2:1 * H2])
        f_g = _ksigmoid(gates[:, 1 * H2:2 * H2])
        g_g = jnp.tanh(gates[:, 2 * H2:3 * H2])
        o_g = _ksigmoid(gates[:, 3 * H2:4 * H2])
        c = f_g * c + i_g * g_g
        h = o_g * jnp.tanh(c)
        # Stream this step's hidden pair [h_f(s) | h_b(T-1-s)] to VMEM scratch;
        # w1 is row-permuted in the wrapper to match this layout.
        hcat_ref[:, s * H2:(s + 1) * H2] = h

    # ---- Fused FC head: K=2HT matmul -> Linear -> sigmoid (lane-dense out).
    z1 = jnp.dot(hcat_ref[...], w1_ref[...],
                 preferred_element_type=jnp.float32) + b1_ref[...]
    z2 = jnp.dot(z1, w2_ref[...],
                 preferred_element_type=jnp.float32) + b2_ref[...]
    out_ref[...] = _ksigmoid(z2).astype(out_ref.dtype)


def siamese_forward(seq_1, seq_2, params, *, input_dim, input_len, tile_b=512):
    """Returns (out_1, out_2), each (B, out_dim) f32.

    params (all f32, torch layout transposed):
      wih_f/wih_b: (input_dim, 4H)  columns ordered [i|f|g|o]
      whh_f/whh_b: (H, 4H)
      b_f/b_b:     (4H,)  (torch b_ih + b_hh combined)
      w1: (2*H*input_len, H)  b1: (H,)   w2: (H, out_dim)  b2: (out_dim,)
    """
    f32 = jnp.float32
    H = params["whh_f"].shape[0]
    out_dim = params["w2"].shape[1]
    T = input_len
    H2, G8 = 2 * H, 8 * H

    # ---- Stack the two branches (shared weights -> one kernel launch).
    B = seq_1.shape[0]
    x1 = seq_1.reshape(B, T, input_dim).astype(f32)
    x2 = seq_2.reshape(B, T, input_dim).astype(f32)
    x = jnp.concatenate([x1, x2], axis=0)                       # (2B, T, Din)

    # Zero-pad Din to a sublane multiple (exact: matching weight rows are 0).
    din_p = _round_up(input_dim, 8)
    if din_p != input_dim:
        x = jnp.pad(x, ((0, 0), (0, 0), (0, din_p - input_dim)))
    x2d = x.reshape(2 * B, T * din_p)                           # lane-dense DMA

    # ---- Batch tiling; cap tile at ceil(B2/2) so the "parallel" axis has >=2
    # grid steps when possible (shards across v7x's two TensorCores).
    b2 = 2 * B
    tb = max(8, min(_round_up(tile_b, 8), _round_up(b2, 8)))
    if b2 > 8:
        tb = min(tb, _round_up((b2 + 1) // 2, 8))
    bp = _round_up(b2, tb)
    if bp != b2:
        x2d = jnp.pad(x2d, ((0, bp - b2), (0, 0)))

    # ---- Wrapper-side weight plumbing (would be precomputed once at init).
    wih_f, wih_b = params["wih_f"].astype(f32), params["wih_b"].astype(f32)
    whh_f, whh_b = params["whh_f"].astype(f32), params["whh_b"].astype(f32)
    b_f, b_b = params["b_f"].astype(f32), params["b_b"].astype(f32)

    # (a) Time-block input weight: output column block s = [fwd gates at time s
    #     interleaved with bwd gates at time T-1-s].  NOTE: O(T^2) zeros; fine
    #     for small input_len, revisit if T grows.
    wih_big = jnp.zeros((T * din_p, T * G8), f32)
    for s in range(T):
        tr = T - 1 - s
        for k in range(4):                       # gate order i, f, g, o
            wih_big = wih_big.at[
                s * din_p:s * din_p + input_dim,
                s * G8 + (2 * k) * H: s * G8 + (2 * k + 1) * H].set(
                    wih_f[:, k * H:(k + 1) * H])
            wih_big = wih_big.at[
                tr * din_p:tr * din_p + input_dim,
                s * G8 + (2 * k + 1) * H: s * G8 + (2 * k + 2) * H].set(
                    wih_b[:, k * H:(k + 1) * H])

    bias_il = jnp.concatenate(
        [v for k in range(4)
         for v in (b_f[k * H:(k + 1) * H], b_b[k * H:(k + 1) * H])])
    bias_big = jnp.tile(bias_il, T).reshape(1, T * G8).astype(f32)

    # (b) Block-diagonal recurrent weight: rows 0:H act on h_f, rows H:2H on
    #     h_b; columns follow the interleaved gate layout.
    whh_bd = jnp.zeros((H2, G8), f32)
    for k in range(4):
        whh_bd = whh_bd.at[:H, (2 * k) * H:(2 * k + 1) * H].set(
            whh_f[:, k * H:(k + 1) * H])
        whh_bd = whh_bd.at[H:, (2 * k + 1) * H:(2 * k + 2) * H].set(
            whh_b[:, k * H:(k + 1) * H])

    # (c) Row-permuted FC weight matching the hcat scratch layout
    #     [h_f(0), h_b(T-1), h_f(1), h_b(T-2), ...] vs torch's
    #     [h_f(0), h_b(0), h_f(1), h_b(1), ...].
    w1 = params["w1"].astype(f32)
    w1_rows = []
    for s in range(T):
        tr = T - 1 - s
        w1_rows.append(w1[(2 * s) * H:(2 * s + 1) * H, :])         # h_f(s)
        w1_rows.append(w1[(2 * tr + 1) * H:(2 * tr + 2) * H, :])   # h_b(T-1-s)
    w1r = jnp.concatenate(w1_rows, axis=0)                         # (2HT, H)
    b1r = params["b1"].reshape(1, H).astype(f32)

    # (d) Lane-dense output head: pad out_dim to a full 128-lane tile.
    odp = _round_up(out_dim, 128)
    w2p = jnp.pad(params["w2"].astype(f32), ((0, 0), (0, odp - out_dim)))
    b2p = jnp.pad(params["b2"].astype(f32), (0, odp - out_dim)).reshape(1, odp)

    out = pl.pallas_call(
        _siamese_bilstm_kernel,
        out_shape=jax.ShapeDtypeStruct((bp, odp), f32),
        grid=(bp // tb,),
        in_specs=[
            pl.BlockSpec((tb, T * din_p), lambda i: (i, 0)),    # x batch tile
            pl.BlockSpec(wih_big.shape, lambda i: (0, 0)),      # resident weights
            pl.BlockSpec(bias_big.shape, lambda i: (0, 0)),
            pl.BlockSpec(whh_bd.shape, lambda i: (0, 0)),
            pl.BlockSpec(w1r.shape, lambda i: (0, 0)),
            pl.BlockSpec(b1r.shape, lambda i: (0, 0)),
            pl.BlockSpec(w2p.shape, lambda i: (0, 0)),
            pl.BlockSpec(b2p.shape, lambda i: (0, 0)),
        ],
        out_specs=pl.BlockSpec((tb, odp), lambda i: (i, 0)),
        scratch_shapes=[
            pltpu.VMEM((tb, T * G8), f32),   # hoisted input-gate projections
            pltpu.VMEM((tb, T * H2), f32),   # streamed hidden states for FC head
        ],
        compiler_params=pltpu.CompilerParams(
            dimension_semantics=("parallel",),
            vmem_limit_bytes=64 * 1024 * 1024),
    )(x2d, wih_big, bias_big, whh_bd, w1r, b1r, w2p, b2p)

    out = out[:, :out_dim]
    return out[:B], out[B:b2]


def _reference_branch(seq, params, *, input_dim, input_len):
    """Pure-JAX BiLSTM branch (same math as torch nn.LSTM + fc + sigmoid)."""
    H = params["whh_f"].shape[0]
    B = seq.shape[0]
    x = seq.reshape(B, input_len, input_dim).astype(jnp.float32)

    def sigmoid(v):
        return 1.0 / (1.0 + jnp.exp(-v))

    def direction(wih, whh, b, order):
        h = jnp.zeros((B, H), jnp.float32)
        c = jnp.zeros((B, H), jnp.float32)
        hs = [None] * input_len
        for t in order:
            g = x[:, t, :] @ wih + h @ whh + b
            i_g = sigmoid(g[:, :H])
            f_g = sigmoid(g[:, H:2 * H])
            g_g = jnp.tanh(g[:, 2 * H:3 * H])
            o_g = sigmoid(g[:, 3 * H:])
            c = f_g * c + i_g * g_g
            h = o_g * jnp.tanh(c)
            hs[t] = h
        return hs

    hf = direction(params["wih_f"], params["whh_f"], params["b_f"],
                   range(input_len))
    hb = direction(params["wih_b"], params["whh_b"], params["b_b"],
                   range(input_len - 1, -1, -1))
    res = jnp.concatenate(
        [v for t in range(input_len) for v in (hf[t], hb[t])], axis=-1)
    z1 = res @ params["w1"] + params["b1"]
    z2 = z1 @ params["w2"] + params["b2"]
    return sigmoid(z2)


if __name__ == "__main__":
    input_dim, hidden, out_dim, input_len = 4, 32, 8, 8
    batch = 2

    key = jax.random.PRNGKey(0)
    ks = jax.random.split(key, 12)
    s = 0.1
    params = {
        "wih_f": s * jax.random.normal(ks[0], (input_dim, 4 * hidden), jnp.float32),
        "whh_f": s * jax.random.normal(ks[1], (hidden, 4 * hidden), jnp.float32),
        "b_f":   s * jax.random.normal(ks[2], (4 * hidden,), jnp.float32),
        "wih_b": s * jax.random.normal(ks[3], (input_dim, 4 * hidden), jnp.float32),
        "whh_b": s * jax.random.normal(ks[4], (hidden, 4 * hidden), jnp.float32),
        "b_b":   s * jax.random.normal(ks[5], (4 * hidden,), jnp.float32),
        "w1":    s * jax.random.normal(ks[6], (2 * hidden * input_len, hidden), jnp.float32),
        "b1":    s * jax.random.normal(ks[7], (hidden,), jnp.float32),
        "w2":    s * jax.random.normal(ks[8], (hidden, out_dim), jnp.float32),
        "b2":    s * jax.random.normal(ks[9], (out_dim,), jnp.float32),
    }
    seq_1 = jax.random.normal(ks[10], (batch, input_len, input_dim), jnp.float32)
    seq_2 = jax.random.normal(ks[11], (batch, input_len, input_dim), jnp.float32)

    out_1, out_2 = siamese_forward(seq_1, seq_2, params,
                                   input_dim=input_dim, input_len=input_len)
    jax.block_until_ready((out_1, out_2))

    ref_1 = _reference_branch(seq_1, params, input_dim=input_dim, input_len=input_len)
    ref_2 = _reference_branch(seq_2, params, input_dim=input_dim, input_len=input_len)
    assert out_1.shape == (batch, out_dim) and out_2.shape == (batch, out_dim)
    assert jnp.allclose(out_1, ref_1, rtol=1e-4, atol=3e-5), (out_1, ref_1)
    assert jnp.allclose(out_2, ref_2, rtol=1e-4, atol=3e-5), (out_2, ref_2)

    print("KERNEL_OK")
</pallas_src>

<mosaic_0001>
module attributes {stable_mosaic.version = 11 : i64} {
  func.func @_siamese_bilstm_kernel(%arg0: i32, %arg1: memref<8x64xf32, #tpu.memory_space<vmem>>, %arg2: memref<64x2048xf32, #tpu.memory_space<vmem>>, %arg3: memref<1x2048xf32, #tpu.memory_space<vmem>>, %arg4: memref<64x256xf32, #tpu.memory_space<vmem>>, %arg5: memref<512x32xf32, #tpu.memory_space<vmem>>, %arg6: memref<1x32xf32, #tpu.memory_space<vmem>>, %arg7: memref<32x128xf32, #tpu.memory_space<vmem>>, %arg8: memref<1x128xf32, #tpu.memory_space<vmem>>, %arg9: memref<8x128xf32, #tpu.memory_space<vmem>>, %arg10: memref<8x2048xf32, #tpu.memory_space<vmem>>, %arg11: memref<8x512xf32, #tpu.memory_space<vmem>>) attributes {dimension_semantics = [#tpu.dimension_semantics<parallel>], iteration_bounds = array<i64: 1>, scalar_prefetch = 0 : i64, scratch_operands = 2 : i64, tpu.core_type = #tpu.core_type<tc>, window_params = [{transform_indices = @transform_0, window_bounds = array<i64: 8, 64>}, {pipeline_mode = #tpu.pipeline_mode<synchronous>, transform_indices = @transform_1, window_bounds = array<i64: 64, 2048>}, {pipeline_mode = #tpu.pipeline_mode<synchronous>, transform_indices = @transform_2, window_bounds = array<i64: 1, 2048>}, {pipeline_mode = #tpu.pipeline_mode<synchronous>, transform_indices = @transform_3, window_bounds = array<i64: 64, 256>}, {pipeline_mode = #tpu.pipeline_mode<synchronous>, transform_indices = @transform_4, window_bounds = array<i64: 512, 32>}, {pipeline_mode = #tpu.pipeline_mode<synchronous>, transform_indices = @transform_5, window_bounds = array<i64: 1, 32>}, {pipeline_mode = #tpu.pipeline_mode<synchronous>, transform_indices = @transform_6, window_bounds = array<i64: 32, 128>}, {pipeline_mode = #tpu.pipeline_mode<synchronous>, transform_indices = @transform_7, window_bounds = array<i64: 1, 128>}, {transform_indices = @transform_8, window_bounds = array<i64: 8, 128>}]} {
    %c0 = arith.constant 0 : index
    %c0_0 = arith.constant 0 : index
    %0 = vector.load %arg1[%c0, %c0_0] : memref<8x64xf32, #tpu.memory_space<vmem>>, vector<8x64xf32>
    %c0_1 = arith.constant 0 : index
    %c0_2 = arith.constant 0 : index
    %1 = vector.load %arg2[%c0_1, %c0_2] : memref<64x2048xf32, #tpu.memory_space<vmem>>, vector<64x2048xf32>
    %cst = arith.constant dense<0.000000e+00> : vector<8x2048xf32>
    %2 = tpu.matmul %0, %1, %cst {dimension_numbers = #tpu.dot_dimension_numbers<[1], [0], [0], [1], [0, 0, 1, 1], [], []>} : vector<8x64xf32>, vector<64x2048xf32>, vector<8x2048xf32> -> vector<8x2048xf32>
    %c0_3 = arith.constant 0 : index
    %c0_4 = arith.constant 0 : index
    %3 = vector.load %arg3[%c0_3, %c0_4] : memref<1x2048xf32, #tpu.memory_space<vmem>>, vector<1x2048xf32>
    %4 = vector.broadcast %3 : vector<1x2048xf32> to vector<8x2048xf32>
    %5 = arith.addf %2, %4 : vector<8x2048xf32>
    %c0_5 = arith.constant 0 : index
    %c0_6 = arith.constant 0 : index
    %6 = vector.load %arg10[%c0_5, %c0_6] : memref<8x2048xf32, #tpu.memory_space<vmem>>, vector<8x2048xf32>
    tpu.vector_store %arg10[%c0_5, %c0_6], %5 {strides = array<i32>} : memref<8x2048xf32, #tpu.memory_space<vmem>>, vector<8x2048xf32>,
    %c0_7 = arith.constant 0 : index
    %c0_8 = arith.constant 0 : index
    %7 = vector.load %arg4[%c0_7, %c0_8] : memref<64x256xf32, #tpu.memory_space<vmem>>, vector<64x256xf32>
    %cst_9 = arith.constant 0.000000e+00 : f32
    %8 = vector.broadcast %cst_9 : f32 to vector<8x64xf32>
    %cst_10 = arith.constant 0.000000e+00 : f32
    %9 = vector.broadcast %cst_10 : f32 to vector<8x64xf32>
    %c0_11 = arith.constant 0 : index
    %c0_12 = arith.constant 0 : index
    %10 = vector.load %arg10[%c0_11, %c0_12] : memref<8x2048xf32, #tpu.memory_space<vmem>>, vector<8x256xf32>
    %cst_13 = arith.constant dense<0.000000e+00> : vector<8x256xf32>
    %11 = tpu.matmul %8, %7, %cst_13 {dimension_numbers = #tpu.dot_dimension_numbers<[1], [0], [0], [1], [0, 0, 1, 1], [], []>} : vector<8x64xf32>, vector<64x256xf32>, vector<8x256xf32> -> vector<8x256xf32>
    %12 = arith.addf %10, %11 : vector<8x256xf32>
    %13 = vector.extract_strided_slice %12 {offsets = [0, 0], sizes = [8, 64], strides = [1, 1]} : vector<8x256xf32> to vector<8x64xf32>
    %cst_14 = arith.constant 5.000000e-01 : f32
    %14 = vector.broadcast %cst_14 : f32 to vector<8x64xf32>
    %15 = arith.mulf %14, %13 : vector<8x64xf32>
    %16 = math.tanh %15 : vector<8x64xf32>
    %cst_15 = arith.constant 5.000000e-01 : f32
    %17 = vector.broadcast %cst_15 : f32 to vector<8x64xf32>
    %18 = arith.mulf %17, %16 : vector<8x64xf32>
    %cst_16 = arith.constant 5.000000e-01 : f32
    %19 = vector.broadcast %cst_16 : f32 to vector<8x64xf32>
    %20 = arith.addf %18, %19 : vector<8x64xf32>
    %21 = vector.extract_strided_slice %12 {offsets = [0, 64], sizes = [8, 64], strides = [1, 1]} : vector<8x256xf32> to vector<8x64xf32>
    %cst_17 = arith.constant 5.000000e-01 : f32
    %22 = vector.broadcast %cst_17 : f32 to vector<8x64xf32>
    %23 = arith.mulf %22, %21 : vector<8x64xf32>
    %24 = math.tanh %23 : vector<8x64xf32>
    %cst_18 = arith.constant 5.000000e-01 : f32
    %25 = vector.broadcast %cst_18 : f32 to vector<8x64xf32>
    %26 = arith.mulf %25, %24 : vector<8x64xf32>
    %cst_19 = arith.constant 5.000000e-01 : f32
    %27 = vector.broadcast %cst_19 : f32 to vector<8x64xf32>
    %28 = arith.addf %26, %27 : vector<8x64xf32>
    %29 = vector.extract_strided_slice %12 {offsets = [0, 128], sizes = [8, 64], strides = [1, 1]} : vector<8x256xf32> to vector<8x64xf32>
    %30 = math.tanh %29 : vector<8x64xf32>
    %31 = vector.extract_strided_slice %12 {offsets = [0, 192], sizes = [8, 64], strides = [1, 1]} : vector<8x256xf32> to vector<8x64xf32>
    %cst_20 = arith.constant 5.000000e-01 : f32
    %32 = vector.broadcast %cst_20 : f32 to vector<8x64xf32>
    %33 = arith.mulf %32, %31 : vector<8x64xf32>
    %34 = math.tanh %33 : vector<8x64xf32>
    %cst_21 = arith.constant 5.000000e-01 : f32
    %35 = vector.broadcast %cst_21 : f32 to vector<8x64xf32>
    %36 = arith.mulf %35, %34 : vector<8x64xf32>
    %cst_22 = arith.constant 5.000000e-01 : f32
    %37 = vector.broadcast %cst_22 : f32 to vector<8x64xf32>
    %38 = arith.addf %36, %37 : vector<8x64xf32>
    %39 = arith.mulf %28, %9 : vector<8x64xf32>
    %40 = arith.mulf %20, %30 : vector<8x64xf32>
    %41 = arith.addf %39, %40 : vector<8x64xf32>
    %42 = math.tanh %41 : vector<8x64xf32>
    %43 = arith.mulf %38, %42 : vector<8x64xf32>
    %c0_23 = arith.constant 0 : index
    %c0_24 = arith.constant 0 : index
    %44 = vector.load %arg11[%c0_23, %c0_24] : memref<8x512xf32, #tpu.memory_space<vmem>>, vector<8x64xf32>
    tpu.vector_store %arg11[%c0_23, %c0_24], %43 {strides = array<i32>} : memref<8x512xf32, #tpu.memory_space<vmem>>, vector<8x64xf32>,
    %c0_25 = arith.constant 0 : index
    %c256 = arith.constant 256 : index
    %45 = vector.load %arg10[%c0_25, %c256] : memref<8x2048xf32, #tpu.memory_space<vmem>>, vector<8x256xf32>
    %cst_26 = arith.constant dense<0.000000e+00> : vector<8x256xf32>
    %46 = tpu.matmul %43, %7, %cst_26 {dimension_numbers = #tpu.dot_dimension_numbers<[1], [0], [0], [1], [0, 0, 1, 1], [], []>} : vector<8x64xf32>, vector<64x256xf32>, vector<8x256xf32> -> vector<8x256xf32>
    %47 = arith.addf %45, %46 : vector<8x256xf32>
    %48 = vector.extract_strided_slice %47 {offsets = [0, 0], sizes = [8, 64], strides = [1, 1]} : vector<8x256xf32> to vector<8x64xf32>
    %cst_27 = arith.constant 5.000000e-01 : f32
    %49 = vector.broadcast %cst_27 : f32 to vector<8x64xf32>
    %50 = arith.mulf %49, %48 : vector<8x64xf32>
    %51 = math.tanh %50 : vector<8x64xf32>
    %cst_28 = arith.constant 5.000000e-01 : f32
    %52 = vector.broadcast %cst_28 : f32 to vector<8x64xf32>
    %53 = arith.mulf %52, %51 : vector<8x64xf32>
    %cst_29 = arith.constant 5.000000e-01 : f32
    %54 = vector.broadcast %cst_29 : f32 to vector<8x64xf32>
    %55 = arith.addf %53, %54 : vector<8x64xf32>
    %56 = vector.extract_strided_slice %47 {offsets = [0, 64], sizes = [8, 64], strides = [1, 1]} : vector<8x256xf32> to vector<8x64xf32>
    %cst_30 = arith.constant 5.000000e-01 : f32
    %57 = vector.broadcast %cst_30 : f32 to vector<8x64xf32>
    %58 = arith.mulf %57, %56 : vector<8x64xf32>
    %59 = math.tanh %58 : vector<8x64xf32>
    %cst_31 = arith.constant 5.000000e-01 : f32
    %60 = vector.broadcast %cst_31 : f32 to vector<8x64xf32>
    %61 = arith.mulf %60, %59 : vector<8x64xf32>
    %cst_32 = arith.constant 5.000000e-01 : f32
    %62 = vector.broadcast %cst_32 : f32 to vector<8x64xf32>
    %63 = arith.addf %61, %62 : vector<8x64xf32>
    %64 = vector.extract_strided_slice %47 {offsets = [0, 128], sizes = [8, 64], strides = [1, 1]} : vector<8x256xf32> to vector<8x64xf32>
    %65 = math.tanh %64 : vector<8x64xf32>
    %66 = vector.extract_strided_slice %47 {offsets = [0, 192], sizes = [8, 64], strides = [1, 1]} : vector<8x256xf32> to vector<8x64xf32>
    %cst_33 = arith.constant 5.000000e-01 : f32
    %67 = vector.broadcast %cst_33 : f32 to vector<8x64xf32>
    %68 = arith.mulf %67, %66 : vector<8x64xf32>
    %69 = math.tanh %68 : vector<8x64xf32>
    %cst_34 = arith.constant 5.000000e-01 : f32
    %70 = vector.broadcast %cst_34 : f32 to vector<8x64xf32>
    %71 = arith.mulf %70, %69 : vector<8x64xf32>
    %cst_35 = arith.constant 5.000000e-01 : f32
    %72 = vector.broadcast %cst_35 : f32 to vector<8x64xf32>
    %73 = arith.addf %71, %72 : vector<8x64xf32>
    %74 = arith.mulf %63, %41 : vector<8x64xf32>
    %75 = arith.mulf %55, %65 : vector<8x64xf32>
    %76 = arith.addf %74, %75 : vector<8x64xf32>
    %77 = math.tanh %76 : vector<8x64xf32>
    %78 = arith.mulf %73, %77 : vector<8x64xf32>
    %c0_36 = arith.constant 0 : index
    %c64 = arith.constant 64 : index
    %79 = vector.load %arg11[%c0_36, %c64] : memref<8x512xf32, #tpu.memory_space<vmem>>, vector<8x64xf32>
    tpu.vector_store %arg11[%c0_36, %c64], %78 {strides = array<i32>} : memref<8x512xf32, #tpu.memory_space<vmem>>, vector<8x64xf32>,
    %c0_37 = arith.constant 0 : index
    %c512 = arith.constant 512 : index
    %80 = vector.load %arg10[%c0_37, %c512] : memref<8x2048xf32, #tpu.memory_space<vmem>>, vector<8x256xf32>
    %cst_38 = arith.constant dense<0.000000e+00> : vector<8x256xf32>
    %81 = tpu.matmul %78, %7, %cst_38 {dimension_numbers = #tpu.dot_dimension_numbers<[1], [0], [0], [1], [0, 0, 1, 1], [], []>} : vector<8x64xf32>, vector<64x256xf32>, vector<8x256xf32> -> vector<8x256xf32>
    %82 = arith.addf %80, %81 : vector<8x256xf32>
    %83 = vector.extract_strided_slice %82 {offsets = [0, 0], sizes = [8, 64], strides = [1, 1]} : vector<8x256xf32> to vector<8x64xf32>
    %cst_39 = arith.constant 5.000000e-01 : f32
    %84 = vector.broadcast %cst_39 : f32 to vector<8x64xf32>
    %85 = arith.mulf %84, %83 : vector<8x64xf32>
    %86 = math.tanh %85 : vector<8x64xf32>
    %cst_40 = arith.constant 5.000000e-01 : f32
    %87 = vector.broadcast %cst_40 : f32 to vector<8x64xf32>
    %88 = arith.mulf %87, %86 : vector<8x64xf32>
    %cst_41 = arith.constant 5.000000e-01 : f32
    %89 = vector.broadcast %cst_41 : f32 to vector<8x64xf32>
    %90 = arith.addf %88, %89 : vector<8x64xf32>
    %91 = vector.extract_strided_slice %82 {offsets = [0, 64], sizes = [8, 64], strides = [1, 1]} : vector<8x256xf32> to vector<8x64xf32>
    %cst_42 = arith.constant 5.000000e-01 : f32
    %92 = vector.broadcast %cst_42 : f32 to vector<8x64xf32>
    %93 = arith.mulf %92, %91 : vector<8x64xf32>
    %94 = math.tanh %93 : vector<8x64xf32>
    %cst_43 = arith.constant 5.000000e-01 : f32
    %95 = vector.broadcast %cst_43 : f32 to vector<8x64xf32>
    %96 = arith.mulf %95, %94 : vector<8x64xf32>
    %cst_44 = arith.constant 5.000000e-01 : f32
    %97 = vector.broadcast %cst_44 : f32 to vector<8x64xf32>
    %98 = arith.addf %96, %97 : vector<8x64xf32>
    %99 = vector.extract_strided_slice %82 {offsets = [0, 128], sizes = [8, 64], strides = [1, 1]} : vector<8x256xf32> to vector<8x64xf32>
    %100 = math.tanh %99 : vector<8x64xf32>
    %101 = vector.extract_strided_slice %82 {offsets = [0, 192], sizes = [8, 64], strides = [1, 1]} : vector<8x256xf32> to vector<8x64xf32>
    %cst_45 = arith.constant 5.000000e-01 : f32
    %102 = vector.broadcast %cst_45 : f32 to vector<8x64xf32>
    %103 = arith.mulf %102, %101 : vector<8x64xf32>
    %104 = math.tanh %103 : vector<8x64xf32>
    %cst_46 = arith.constant 5.000000e-01 : f32
    %105 = vector.broadcast %cst_46 : f32 to vector<8x64xf32>
    %106 = arith.mulf %105, %104 : vector<8x64xf32>
    %cst_47 = arith.constant 5.000000e-01 : f32
    %107 = vector.broadcast %cst_47 : f32 to vector<8x64xf32>
    %108 = arith.addf %106, %107 : vector<8x64xf32>
    %109 = arith.mulf %98, %76 : vector<8x64xf32>
    %110 = arith.mulf %90, %100 : vector<8x64xf32>
    %111 = arith.addf %109, %110 : vector<8x64xf32>
    %112 = math.tanh %111 : vector<8x64xf32>
    %113 = arith.mulf %108, %112 : vector<8x64xf32>
    %c0_48 = arith.constant 0 : index
    %c128 = arith.constant 128 : index
    %114 = vector.load %arg11[%c0_48, %c128] : memref<8x512xf32, #tpu.memory_space<vmem>>, vector<8x64xf32>
    tpu.vector_store %arg11[%c0_48, %c128], %113 {strides = array<i32>} : memref<8x512xf32, #tpu.memory_space<vmem>>, vector<8x64xf32>,
    %c0_49 = arith.constant 0 : index
    %c768 = arith.constant 768 : index
    %115 = vector.load %arg10[%c0_49, %c768] : memref<8x2048xf32, #tpu.memory_space<vmem>>, vector<8x256xf32>
    %cst_50 = arith.constant dense<0.000000e+00> : vector<8x256xf32>
    %116 = tpu.matmul %113, %7, %cst_50 {dimension_numbers = #tpu.dot_dimension_numbers<[1], [0], [0], [1], [0, 0, 1, 1], [], []>} : vector<8x64xf32>, vector<64x256xf32>, vector<8x256xf32> -> vector<8x256xf32>
    %117 = arith.addf %115, %116 : vector<8x256xf32>
    %118 = vector.extract_strided_slice %117 {offsets = [0, 0], sizes = [8, 64], strides = [1, 1]} : vector<8x256xf32> to vector<8x64xf32>
    %cst_51 = arith.constant 5.000000e-01 : f32
    %119 = vector.broadcast %cst_51 : f32 to vector<8x64xf32>
    %120 = arith.mulf %119, %118 : vector<8x64xf32>
    %121 = math.tanh %120 : vector<8x64xf32>
    %cst_52 = arith.constant 5.000000e-01 : f32
    %122 = vector.broadcast %cst_52 : f32 to vector<8x64xf32>
    %123 = arith.mulf %122, %121 : vector<8x64xf32>
    %cst_53 = arith.constant 5.000000e-01 : f32
    %124 = vector.broadcast %cst_53 : f32 to vector<8x64xf32>
    %125 = arith.addf %123, %124 : vector<8x64xf32>
    %126 = vector.extract_strided_slice %117 {offsets = [0, 64], sizes = [8, 64], strides = [1, 1]} : vector<8x256xf32> to vector<8x64xf32>
    %cst_54 = arith.constant 5.000000e-01 : f32
    %127 = vector.broadcast %cst_54 : f32 to vector<8x64xf32>
    %128 = arith.mulf %127, %126 : vector<8x64xf32>
    %129 = math.tanh %128 : vector<8x64xf32>
    %cst_55 = arith.constant 5.000000e-01 : f32
    %130 = vector.broadcast %cst_55 : f32 to vector<8x64xf32>
    %131 = arith.mulf %130, %129 : vector<8x64xf32>
    %cst_56 = arith.constant 5.000000e-01 : f32
    %132 = vector.broadcast %cst_56 : f32 to vector<8x64xf32>
    %133 = arith.addf %131, %132 : vector<8x64xf32>
    %134 = vector.extract_strided_slice %117 {offsets = [0, 128], sizes = [8, 64], strides = [1, 1]} : vector<8x256xf32> to vector<8x64xf32>
    %135 = math.tanh %134 : vector<8x64xf32>
    %136 = vector.extract_strided_slice %117 {offsets = [0, 192], sizes = [8, 64], strides = [1, 1]} : vector<8x256xf32> to vector<8x64xf32>
    %cst_57 = arith.constant 5.000000e-01 : f32
    %137 = vector.broadcast %cst_57 : f32 to vector<8x64xf32>
    %138 = arith.mulf %137, %136 : vector<8x64xf32>
    %139 = math.tanh %138 : vector<8x64xf32>
    %cst_58 = arith.constant 5.000000e-01 : f32
    %140 = vector.broadcast %cst_58 : f32 to vector<8x64xf32>
    %141 = arith.mulf %140, %139 : vector<8x64xf32>
    %cst_59 = arith.constant 5.000000e-01 : f32
    %142 = vector.broadcast %cst_59 : f32 to vector<8x64xf32>
    %143 = arith.addf %141, %142 : vector<8x64xf32>
    %144 = arith.mulf %133, %111 : vector<8x64xf32>
    %145 = arith.mulf %125, %135 : vector<8x64xf32>
    %146 = arith.addf %144, %145 : vector<8x64xf32>
    %147 = math.tanh %146 : vector<8x64xf32>
    %148 = arith.mulf %143, %147 : vector<8x64xf32>
    %c0_60 = arith.constant 0 : index
    %c192 = arith.constant 192 : index
    %149 = vector.load %arg11[%c0_60, %c192] : memref<8x512xf32, #tpu.memory_space<vmem>>, vector<8x64xf32>
    tpu.vector_store %arg11[%c0_60, %c192], %148 {strides = array<i32>} : memref<8x512xf32, #tpu.memory_space<vmem>>, vector<8x64xf32>,
    %c0_61 = arith.constant 0 : index
    %c1024 = arith.constant 1024 : index
    %150 = vector.load %arg10[%c0_61, %c1024] : memref<8x2048xf32, #tpu.memory_space<vmem>>, vector<8x256xf32>
    %cst_62 = arith.constant dense<0.000000e+00> : vector<8x256xf32>
    %151 = tpu.matmul %148, %7, %cst_62 {dimension_numbers = #tpu.dot_dimension_numbers<[1], [0], [0], [1], [0, 0, 1, 1], [], []>} : vector<8x64xf32>, vector<64x256xf32>, vector<8x256xf32> -> vector<8x256xf32>
    %152 = arith.addf %150, %151 : vector<8x256xf32>
    %153 = vector.extract_strided_slice %152 {offsets = [0, 0], sizes = [8, 64], strides = [1, 1]} : vector<8x256xf32> to vector<8x64xf32>
    %cst_63 = arith.constant 5.000000e-01 : f32
    %154 = vector.broadcast %cst_63 : f32 to vector<8x64xf32>
    %155 = arith.mulf %154, %153 : vector<8x64xf32>
    %156 = math.tanh %155 : vector<8x64xf32>
    %cst_64 = arith.constant 5.000000e-01 : f32
    %157 = vector.broadcast %cst_64 : f32 to vector<8x64xf32>
    %158 = arith.mulf %157, %156 : vector<8x64xf32>
    %cst_65 = arith.constant 5.000000e-01 : f32
    %159 = vector.broadcast %cst_65 : f32 to vector<8x64xf32>
    %160 = arith.addf %158, %159 : vector<8x64xf32>
    %161 = vector.extract_strided_slice %152 {offsets = [0, 64], sizes = [8, 64], strides = [1, 1]} : vector<8x256xf32> to vector<8x64xf32>
    %cst_66 = arith.constant 5.000000e-01 : f32
    %162 = vector.broadcast %cst_66 : f32 to vector<8x64xf32>
    %163 = arith.mulf %162, %161 : vector<8x64xf32>
    %164 = math.tanh %163 : vector<8x64xf32>
    %cst_67 = arith.constant 5.000000e-01 : f32
    %165 = vector.broadcast %cst_67 : f32 to vector<8x64xf32>
    %166 = arith.mulf %165, %164 : vector<8x64xf32>
    %cst_68 = arith.constant 5.000000e-01 : f32
    %167 = vector.broadcast %cst_68 : f32 to vector<8x64xf32>
    %168 = arith.addf %166, %167 : vector<8x64xf32>
    %169 = vector.extract_strided_slice %152 {offsets = [0, 128], sizes = [8, 64], strides = [1, 1]} : vector<8x256xf32> to vector<8x64xf32>
    %170 = math.tanh %169 : vector<8x64xf32>
    %171 = vector.extract_strided_slice %152 {offsets = [0, 192], sizes = [8, 64], strides = [1, 1]} : vector<8x256xf32> to vector<8x64xf32>
    %cst_69 = arith.constant 5.000000e-01 : f32
    %172 = vector.broadcast %cst_69 : f32 to vector<8x64xf32>
    %173 = arith.mulf %172, %171 : vector<8x64xf32>
    %174 = math.tanh %173 : vector<8x64xf32>
    %cst_70 = arith.constant 5.000000e-01 : f32
    %175 = vector.broadcast %cst_70 : f32 to vector<8x64xf32>
    %176 = arith.mulf %175, %174 : vector<8x64xf32>
    %cst_71 = arith.constant 5.000000e-01 : f32
    %177 = vector.broadcast %cst_71 : f32 to vector<8x64xf32>
    %178 = arith.addf %176, %177 : vector<8x64xf32>
    %179 = arith.mulf %168, %146 : vector<8x64xf32>
    %180 = arith.mulf %160, %170 : vector<8x64xf32>
    %181 = arith.addf %179, %180 : vector<8x64xf32>
    %182 = math.tanh %181 : vector<8x64xf32>
    %183 = arith.mulf %178, %182 : vector<8x64xf32>
    %c0_72 = arith.constant 0 : index
    %c256_73 = arith.constant 256 : index
    %184 = vector.load %arg11[%c0_72, %c256_73] : memref<8x512xf32, #tpu.memory_space<vmem>>, vector<8x64xf32>
    tpu.vector_store %arg11[%c0_72, %c256_73], %183 {strides = array<i32>} : memref<8x512xf32, #tpu.memory_space<vmem>>, vector<8x64xf32>,
    %c0_74 = arith.constant 0 : index
    %c1280 = arith.constant 1280 : index
    %185 = vector.load %arg10[%c0_74, %c1280] : memref<8x2048xf32, #tpu.memory_space<vmem>>, vector<8x256xf32>
    %cst_75 = arith.constant dense<0.000000e+00> : vector<8x256xf32>
    %186 = tpu.matmul %183, %7, %cst_75 {dimension_numbers = #tpu.dot_dimension_numbers<[1], [0], [0], [1], [0, 0, 1, 1], [], []>} : vector<8x64xf32>, vector<64x256xf32>, vector<8x256xf32> -> vector<8x256xf32>
    %187 = arith.addf %185, %186 : vector<8x256xf32>
    %188 = vector.extract_strided_slice %187 {offsets = [0, 0], sizes = [8, 64], strides = [1, 1]} : vector<8x256xf32> to vector<8x64xf32>
    %cst_76 = arith.constant 5.000000e-01 : f32
    %189 = vector.broadcast %cst_76 : f32 to vector<8x64xf32>
    %190 = arith.mulf %189, %188 : vector<8x64xf32>
    %191 = math.tanh %190 : vector<8x64xf32>
    %cst_77 = arith.constant 5.000000e-01 : f32
    %192 = vector.broadcast %cst_77 : f32 to vector<8x64xf32>
    %193 = arith.mulf %192, %191 : vector<8x64xf32>
    %cst_78 = arith.constant 5.000000e-01 : f32
    %194 = vector.broadcast %cst_78 : f32 to vector<8x64xf32>
    %195 = arith.addf %193, %194 : vector<8x64xf32>
    %196 = vector.extract_strided_slice %187 {offsets = [0, 64], sizes = [8, 64], strides = [1, 1]} : vector<8x256xf32> to vector<8x64xf32>
    %cst_79 = arith.constant 5.000000e-01 : f32
    %197 = vector.broadcast %cst_79 : f32 to vector<8x64xf32>
    %198 = arith.mulf %197, %196 : vector<8x64xf32>
    %199 = math.tanh %198 : vector<8x64xf32>
    %cst_80 = arith.constant 5.000000e-01 : f32
    %200 = vector.broadcast %cst_80 : f32 to vector<8x64xf32>
    %201 = arith.mulf %200, %199 : vector<8x64xf32>
    %cst_81 = arith.constant 5.000000e-01 : f32
    %202 = vector.broadcast %cst_81 : f32 to vector<8x64xf32>
    %203 = arith.addf %201, %202 : vector<8x64xf32>
    %204 = vector.extract_strided_slice %187 {offsets = [0, 128], sizes = [8, 64], strides = [1, 1]} : vector<8x256xf32> to vector<8x64xf32>
    %205 = math.tanh %204 : vector<8x64xf32>
    %206 = vector.extract_strided_slice %187 {offsets = [0, 192], sizes = [8, 64], strides = [1, 1]} : vector<8x256xf32> to vector<8x64xf32>
    %cst_82 = arith.constant 5.000000e-01 : f32
    %207 = vector.broadcast %cst_82 : f32 to vector<8x64xf32>
    %208 = arith.mulf %207, %206 : vector<8x64xf32>
    %209 = math.tanh %208 : vector<8x64xf32>
    %cst_83 = arith.constant 5.000000e-01 : f32
    %210 = vector.broadcast %cst_83 : f32 to vector<8x64xf32>
    %211 = arith.mulf %210, %209 : vector<8x64xf32>
    %cst_84 = arith.constant 5.000000e-01 : f32
    %212 = vector.broadcast %cst_84 : f32 to vector<8x64xf32>
    %213 = arith.addf %211, %212 : vector<8x64xf32>
    %214 = arith.mulf %203, %181 : vector<8x64xf32>
    %215 = arith.mulf %195, %205 : vector<8x64xf32>
    %216 = arith.addf %214, %215 : vector<8x64xf32>
    %217 = math.tanh %216 : vector<8x64xf32>
    %218 = arith.mulf %213, %217 : vector<8x64xf32>
    %c0_85 = arith.constant 0 : index
    %c320 = arith.constant 320 : index
    %219 = vector.load %arg11[%c0_85, %c320] : memref<8x512xf32, #tpu.memory_space<vmem>>, vector<8x64xf32>
    tpu.vector_store %arg11[%c0_85, %c320], %218 {strides = array<i32>} : memref<8x512xf32, #tpu.memory_space<vmem>>, vector<8x64xf32>,
    %c0_86 = arith.constant 0 : index
    %c1536 = arith.constant 1536 : index
    %220 = vector.load %arg10[%c0_86, %c1536] : memref<8x2048xf32, #tpu.memory_space<vmem>>, vector<8x256xf32>
    %cst_87 = arith.constant dense<0.000000e+00> : vector<8x256xf32>
    %221 = tpu.matmul %218, %7, %cst_87 {dimension_numbers = #tpu.dot_dimension_numbers<[1], [0], [0], [1], [0, 0, 1, 1], [], []>} : vector<8x64xf32>, vector<64x256xf32>, vector<8x256xf32> -> vector<8x256xf32>
    %222 = arith.addf %220, %221 : vector<8x256xf32>
    %223 = vector.extract_strided_slice %222 {offsets = [0, 0], sizes = [8, 64], strides = [1, 1]} : vector<8x256xf32> to vector<8x64xf32>
    %cst_88 = arith.constant 5.000000e-01 : f32
    %224 = vector.broadcast %cst_88 : f32 to vector<8x64xf32>
    %225 = arith.mulf %224, %223 : vector<8x64xf32>
    %226 = math.tanh %225 : vector<8x64xf32>
    %cst_89 = arith.constant 5.000000e-01 : f32
    %227 = vector.broadcast %cst_89 : f32 to vector<8x64xf32>
    %228 = arith.mulf %227, %226 : vector<8x64xf32>
    %cst_90 = arith.constant 5.000000e-01 : f32
    %229 = vector.broadcast %cst_90 : f32 to vector<8x64xf32>
    %230 = arith.addf %228, %229 : vector<8x64xf32>
    %231 = vector.extract_strided_slice %222 {offsets = [0, 64], sizes = [8, 64], strides = [1, 1]} : vector<8x256xf32> to vector<8x64xf32>
    %cst_91 = arith.constant 5.000000e-01 : f32
    %232 = vector.broadcast %cst_91 : f32 to vector<8x64xf32>
    %233 = arith.mulf %232, %231 : vector<8x64xf32>
    %234 = math.tanh %233 : vector<8x64xf32>
    %cst_92 = arith.constant 5.000000e-01 : f32
    %235 = vector.broadcast %cst_92 : f32 to vector<8x64xf32>
    %236 = arith.mulf %235, %234 : vector<8x64xf32>
    %cst_93 = arith.constant 5.000000e-01 : f32
    %237 = vector.broadcast %cst_93 : f32 to vector<8x64xf32>
    %238 = arith.addf %236, %237 : vector<8x64xf32>
    %239 = vector.extract_strided_slice %222 {offsets = [0, 128], sizes = [8, 64], strides = [1, 1]} : vector<8x256xf32> to vector<8x64xf32>
    %240 = math.tanh %239 : vector<8x64xf32>
    %241 = vector.extract_strided_slice %222 {offsets = [0, 192], sizes = [8, 64], strides = [1, 1]} : vector<8x256xf32> to vector<8x64xf32>
    %cst_94 = arith.constant 5.000000e-01 : f32
    %242 = vector.broadcast %cst_94 : f32 to vector<8x64xf32>
    %243 = arith.mulf %242, %241 : vector<8x64xf32>
    %244 = math.tanh %243 : vector<8x64xf32>
    %cst_95 = arith.constant 5.000000e-01 : f32
    %245 = vector.broadcast %cst_95 : f32 to vector<8x64xf32>
    %246 = arith.mulf %245, %244 : vector<8x64xf32>
    %cst_96 = arith.constant 5.000000e-01 : f32
    %247 = vector.broadcast %cst_96 : f32 to vector<8x64xf32>
    %248 = arith.addf %246, %247 : vector<8x64xf32>
    %249 = arith.mulf %238, %216 : vector<8x64xf32>
    %250 = arith.mulf %230, %240 : vector<8x64xf32>
    %251 = arith.addf %249, %250 : vector<8x64xf32>
    %252 = math.tanh %251 : vector<8x64xf32>
    %253 = arith.mulf %248, %252 : vector<8x64xf32>
    %c0_97 = arith.constant 0 : index
    %c384 = arith.constant 384 : index
    %254 = vector.load %arg11[%c0_97, %c384] : memref<8x512xf32, #tpu.memory_space<vmem>>, vector<8x64xf32>
    tpu.vector_store %arg11[%c0_97, %c384], %253 {strides = array<i32>} : memref<8x512xf32, #tpu.memory_space<vmem>>, vector<8x64xf32>,
    %c0_98 = arith.constant 0 : index
    %c1792 = arith.constant 1792 : index
    %255 = vector.load %arg10[%c0_98, %c1792] : memref<8x2048xf32, #tpu.memory_space<vmem>>, vector<8x256xf32>
    %cst_99 = arith.constant dense<0.000000e+00> : vector<8x256xf32>
    %256 = tpu.matmul %253, %7, %cst_99 {dimension_numbers = #tpu.dot_dimension_numbers<[1], [0], [0], [1], [0, 0, 1, 1], [], []>} : vector<8x64xf32>, vector<64x256xf32>, vector<8x256xf32> -> vector<8x256xf32>
    %257 = arith.addf %255, %256 : vector<8x256xf32>
    %258 = vector.extract_strided_slice %257 {offsets = [0, 0], sizes = [8, 64], strides = [1, 1]} : vector<8x256xf32> to vector<8x64xf32>
    %cst_100 = arith.constant 5.000000e-01 : f32
    %259 = vector.broadcast %cst_100 : f32 to vector<8x64xf32>
    %260 = arith.mulf %259, %258 : vector<8x64xf32>
    %261 = math.tanh %260 : vector<8x64xf32>
    %cst_101 = arith.constant 5.000000e-01 : f32
    %262 = vector.broadcast %cst_101 : f32 to vector<8x64xf32>
    %263 = arith.mulf %262, %261 : vector<8x64xf32>
    %cst_102 = arith.constant 5.000000e-01 : f32
    %264 = vector.broadcast %cst_102 : f32 to vector<8x64xf32>
    %265 = arith.addf %263, %264 : vector<8x64xf32>
    %266 = vector.extract_strided_slice %257 {offsets = [0, 64], sizes = [8, 64], strides = [1, 1]} : vector<8x256xf32> to vector<8x64xf32>
    %cst_103 = arith.constant 5.000000e-01 : f32
    %267 = vector.broadcast %cst_103 : f32 to vector<8x64xf32>
    %268 = arith.mulf %267, %266 : vector<8x64xf32>
    %269 = math.tanh %268 : vector<8x64xf32>
    %cst_104 = arith.constant 5.000000e-01 : f32
    %270 = vector.broadcast %cst_104 : f32 to vector<8x64xf32>
    %271 = arith.mulf %270, %269 : vector<8x64xf32>
    %cst_105 = arith.constant 5.000000e-01 : f32
    %272 = vector.broadcast %cst_105 : f32 to vector<8x64xf32>
    %273 = arith.addf %271, %272 : vector<8x64xf32>
    %274 = vector.extract_strided_slice %257 {offsets = [0, 128], sizes = [8, 64], strides = [1, 1]} : vector<8x256xf32> to vector<8x64xf32>
    %275 = math.tanh %274 : vector<8x64xf32>
    %276 = vector.extract_strided_slice %257 {offsets = [0, 192], sizes = [8, 64], strides = [1, 1]} : vector<8x256xf32> to vector<8x64xf32>
    %cst_106 = arith.constant 5.000000e-01 : f32
    %277 = vector.broadcast %cst_106 : f32 to vector<8x64xf32>
    %278 = arith.mulf %277, %276 : vector<8x64xf32>
    %279 = math.tanh %278 : vector<8x64xf32>
    %cst_107 = arith.constant 5.000000e-01 : f32
    %280 = vector.broadcast %cst_107 : f32 to vector<8x64xf32>
    %281 = arith.mulf %280, %279 : vector<8x64xf32>
    %cst_108 = arith.constant 5.000000e-01 : f32
    %282 = vector.broadcast %cst_108 : f32 to vector<8x64xf32>
    %283 = arith.addf %281, %282 : vector<8x64xf32>
    %284 = arith.mulf %273, %251 : vector<8x64xf32>
    %285 = arith.mulf %265, %275 : vector<8x64xf32>
    %286 = arith.addf %284, %285 : vector<8x64xf32>
    %287 = math.tanh %286 : vector<8x64xf32>
    %288 = arith.mulf %283, %287 : vector<8x64xf32>
    %c0_109 = arith.constant 0 : index
    %c448 = arith.constant 448 : index
    %289 = vector.load %arg11[%c0_109, %c448] : memref<8x512xf32, #tpu.memory_space<vmem>>, vector<8x64xf32>
    tpu.vector_store %arg11[%c0_109, %c448], %288 {strides = array<i32>} : memref<8x512xf32, #tpu.memory_space<vmem>>, vector<8x64xf32>,
    %c0_110 = arith.constant 0 : index
    %c0_111 = arith.constant 0 : index
    %290 = vector.load %arg11[%c0_110, %c0_111] : memref<8x512xf32, #tpu.memory_space<vmem>>, vector<8x512xf32>
    %c0_112 = arith.constant 0 : index
    %c0_113 = arith.constant 0 : index
    %291 = vector.load %arg5[%c0_112, %c0_113] : memref<512x32xf32, #tpu.memory_space<vmem>>, vector<512x32xf32>
    %cst_114 = arith.constant dense<0.000000e+00> : vector<8x32xf32>
    %292 = tpu.matmul %290, %291, %cst_114 {dimension_numbers = #tpu.dot_dimension_numbers<[1], [0], [0], [1], [0, 0, 1, 1], [], []>} : vector<8x512xf32>, vector<512x32xf32>, vector<8x32xf32> -> vector<8x32xf32>
    %c0_115 = arith.constant 0 : index
    %c0_116 = arith.constant 0 : index
    %293 = vector.load %arg6[%c0_115, %c0_116] : memref<1x32xf32, #tpu.memory_space<vmem>>, vector<1x32xf32>
    %294 = vector.broadcast %293 : vector<1x32xf32> to vector<8x32xf32>
    %295 = arith.addf %292, %294 : vector<8x32xf32>
    %c0_117 = arith.constant 0 : index
    %c0_118 = arith.constant 0 : index
    %296 = vector.load %arg7[%c0_117, %c0_118] : memref<32x128xf32, #tpu.memory_space<vmem>>, vector<32x128xf32>
    %cst_119 = arith.constant dense<0.000000e+00> : vector<8x128xf32>
    %297 = tpu.matmul %295, %296, %cst_119 {dimension_numbers = #tpu.dot_dimension_numbers<[1], [0], [0], [1], [0, 0, 1, 1], [], []>} : vector<8x32xf32>, vector<32x128xf32>, vector<8x128xf32> -> vector<8x128xf32>
    %c0_120 = arith.constant 0 : index
    %c0_121 = arith.constant 0 : index
    %298 = vector.load %arg8[%c0_120, %c0_121] : memref<1x128xf32, #tpu.memory_space<vmem>>, vector<1x128xf32>
    %299 = vector.broadcast %298 : vector<1x128xf32> to vector<8x128xf32>
    %300 = arith.addf %297, %299 : vector<8x128xf32>
    %cst_122 = arith.constant 5.000000e-01 : f32
    %301 = vector.broadcast %cst_122 : f32 to vector<8x128xf32>
    %302 = arith.mulf %301, %300 : vector<8x128xf32>
    %303 = math.tanh %302 : vector<8x128xf32>
    %cst_123 = arith.constant 5.000000e-01 : f32
    %304 = vector.broadcast %cst_123 : f32 to vector<8x128xf32>
    %305 = arith.mulf %304, %303 : vector<8x128xf32>
    %cst_124 = arith.constant 5.000000e-01 : f32
    %306 = vector.broadcast %cst_124 : f32 to vector<8x128xf32>
    %307 = arith.addf %305, %306 : vector<8x128xf32>
    %c0_125 = arith.constant 0 : index
    %c0_126 = arith.constant 0 : index
    %308 = vector.load %arg9[%c0_125, %c0_126] : memref<8x128xf32, #tpu.memory_space<vmem>>, vector<8x128xf32>
    tpu.vector_store %arg9[%c0_125, %c0_126], %307 {strides = array<i32>} : memref<8x128xf32, #tpu.memory_space<vmem>>, vector<8x128xf32>,
    return
  }
  func.func @transform_0(%arg0: i32) -> (i32, i32) {
    %c0_i32 = arith.constant 0 : i32
    %c0_i32_0 = arith.constant 0 : i32
    return %arg0, %c0_i32 : i32, i32
  }
  func.func @transform_1(%arg0: i32) -> (i32, i32) {
    %c0_i32 = arith.constant 0 : i32
    %c0_i32_0 = arith.constant 0 : i32
    %c0_i32_1 = arith.constant 0 : i32
    return %c0_i32, %c0_i32_0 : i32, i32
  }
  func.func @transform_2(%arg0: i32) -> (i32, i32) {
    %c0_i32 = arith.constant 0 : i32
    %c0_i32_0 = arith.constant 0 : i32
    %c0_i32_1 = arith.constant 0 : i32
    return %c0_i32, %c0_i32_0 : i32, i32
  }
  func.func @transform_3(%arg0: i32) -> (i32, i32) {
    %c0_i32 = arith.constant 0 : i32
    %c0_i32_0 = arith.constant 0 : i32
    %c0_i32_1 = arith.constant 0 : i32
    return %c0_i32, %c0_i32_0 : i32, i32
  }
  func.func @transform_4(%arg0: i32) -> (i32, i32) {
    %c0_i32 = arith.constant 0 : i32
    %c0_i32_0 = arith.constant 0 : i32
    %c0_i32_1 = arith.constant 0 : i32
    return %c0_i32, %c0_i32_0 : i32, i32
  }
  func.func @transform_5(%arg0: i32) -> (i32, i32) {
    %c0_i32 = arith.constant 0 : i32
    %c0_i32_0 = arith.constant 0 : i32
    %c0_i32_1 = arith.constant 0 : i32
    return %c0_i32, %c0_i32_0 : i32, i32
  }
  func.func @transform_6(%arg0: i32) -> (i32, i32) {
    %c0_i32 = arith.constant 0 : i32
    %c0_i32_0 = arith.constant 0 : i32
    %c0_i32_1 = arith.constant 0 : i32
    return %c0_i32, %c0_i32_0 : i32, i32
  }
  func.func @transform_7(%arg0: i32) -> (i32, i32) {
    %c0_i32 = arith.constant 0 : i32
    %c0_i32_0 = arith.constant 0 : i32
    %c0_i32_1 = arith.constant 0 : i32
    return %c0_i32, %c0_i32_0 : i32, i32
  }
  func.func @transform_8(%arg0: i32) -> (i32, i32) {
    %c0_i32 = arith.constant 0 : i32
    %c0_i32_0 = arith.constant 0 : i32
    return %arg0, %c0_i32 : i32, i32
  }
}

</mosaic_0001>

<bundles_post_ra>
// kernel: tpu_custom_call.1
= control target key start
LH: loop header
LB: loop body
LE: loop exit
PB: predicated region body
PF: predicated region fallthrough
CT: control target
= control target key end

     0   :  { %13 = vsyncpa [#allocation5], 0  ;;  %s3233_s0 = inlined_call_operand.hbm [shape: f32[8,64], index: 0, kind: input, shape index: {}]   ;;  %s3234_s1 = inlined_call_operand.hbm [shape: f32[64,2048], index: 1, kind: input, shape index: {}]   ;;  %s3235_s2 = inlined_call_operand.hbm [shape: f32[1,2048], index: 2, kind: input, shape index: {}]   ;;  %s3236_s3 = inlined_call_operand.hbm [shape: f32[64,256], index: 3, kind: input, shape index: {}]   ;;  %s3237_s4 = inlined_call_operand.hbm [shape: f32[512,32], index: 4, kind: input, shape index: {}]   ;;  %s3238_s5 = inlined_call_operand.hbm [shape: f32[1,32], index: 5, kind: input, shape index: {}]   ;;  %s3239_s6 = inlined_call_operand.hbm [shape: f32[32,128], index: 6, kind: input, shape index: {}]   ;;  %s3240_s7 = inlined_call_operand.hbm [shape: f32[1,128], index: 7, kind: input, shape index: {}]   ;;  %s3241_s8 = inlined_call_operand.hbm [shape: f32[8,128], index: 8, kind: output, shape index: {}]  }
   0x1   :  { %14 = vsyncpa [#allocation8], 0 }
   0x2   :  { %15 = vsyncpa [#allocation11], 0 }
   0x3   :  { %16 = vsyncpa [#allocation14], 0 }
   0x4   :  { %17 = vsyncpa [#allocation17], 0 }
   0x5   :  { %18 = vsyncpa [#allocation6], 0  ;;  %s2823_s27 = smov [#allocation7]   ;;  %s2613_s9 = scalar_lea.hbm %s3234_s1, 16384 }
   0x6   :  { %s34_s28 = sshll.u32 %s2823_s27, 4  ;;  %p2614_p0 = scmp.ne.s32.totalorder %s3234_s1, %s2613_s9  ;;  %s35_s28 = int_to_ptr.vmem [resolvable:$true] %s34_s28 }
   0x7   :  { %p2617_p1 = scmp.lt.u32.totalorder %s2613_s9, %s3234_s1 }
   0x9   :  { %p2619_p2 = pnand %p2617_p1, %p2614_p0 }
   0xb   :  { %2622 = shalt.err (!%p2619_p2)
}
   0xc   :  { %s2623_s14 = scalar_lea.vmem %s35_s28, 16384  ;;  %p2628_p4 = scmp.lt.s32.totalorder %s35_s28, %s35_s28 }
   0xd   :  { %p2624_p3 = scmp.ne.s32.totalorder %s35_s28, %s2623_s14  ;;  %p2629_p5 = scmp.lt.s32.totalorder %s2623_s14, %s2623_s14 }
   0xf   :  { %p2630_p6 = por %p2629_p5, %p2628_p4 }
  0x11   :  { %p2631_p7 = pnand %p2630_p6, %p2624_p3 }
  0x13   :  { %2634 = shalt.err (!%p2631_p7)
}
  0x14   :  { %s2824_s15 = smov 2048   ;;  %s2825_s16 = smov 128  }
  0x15   :  { %40 = dma.hbm_to_vmem [thread:$0]  %s3234_s1, 16384, %s35_s28, [#allocation8], %s2824_s15, %s2824_s15, %s2825_s16  }
  0x16   :  { %s2826_s19 = smov [#allocation10]   ;;  %s2635_s23 = scalar_lea.hbm %s3236_s3, 2048 }
  0x17   :  { %s56_s20 = sshll.u32 %s2826_s19, 4  ;;  %p2636_p8 = scmp.ne.s32.totalorder %s3236_s3, %s2635_s23  ;;  %s57_s20 = int_to_ptr.vmem [resolvable:$true] %s56_s20 }
  0x18   :  { %p2639_p9 = scmp.lt.u32.totalorder %s2635_s23, %s3236_s3 }
  0x1a   :  { %p2641_p10 = pnand %p2639_p9, %p2636_p8 }
  0x1c   :  { %2644 = shalt.err (!%p2641_p10)
}
  0x1d   :  { %s2645_s29 = scalar_lea.vmem %s57_s20, 2048  ;;  %p2650_p12 = scmp.lt.s32.totalorder %s57_s20, %s57_s20 }
  0x1e   :  { %p2646_p11 = scmp.ne.s32.totalorder %s57_s20, %s2645_s29  ;;  %p2651_p13 = scmp.lt.s32.totalorder %s2645_s29, %s2645_s29 }
  0x20   :  { %p2652_p0 = por %p2651_p13, %p2650_p12 }
  0x22   :  { %p2653_p1 = pnand %p2652_p0, %p2646_p11 }
  0x24   :  { %2656 = shalt.err (!%p2653_p1)
}
  0x25   :  { %s2827_s1 = smov 256   ;;  %s2828_s28 = smov 16  }
  0x26   :  { %62 = dma.hbm_to_vmem [thread:$0]  %s3236_s3, 2048, %s57_s20, [#allocation11], %s2827_s1, %s2827_s1, %s2828_s28  }
  0x27   :  { %s2829_s10 = smov [#allocation13]   ;;  %s2830_s12 = smov [#allocation4]  }
  0x28   :  { %s81_s11 = sshll.u32 %s2829_s10, 4  ;;  %s25_s13 = sshll.u32 %s2830_s12, 4  ;;  %s82_s11 = int_to_ptr.vmem [resolvable:$true] %s81_s11  ;;  %s26_s13 = int_to_ptr.vmem [resolvable:$true] %s25_s13 }
  0x29   :  { %s2657_s17 = scalar_lea.hbm %s3238_s5, 16 }
  0x2a   :  { %p2658_p2 = scmp.ne.s32.totalorder %s3238_s5, %s2657_s17  ;;  %p2661_p3 = scmp.lt.u32.totalorder %s2657_s17, %s3238_s5 }
  0x2c   :  { %p2663_p4 = pnand %p2661_p3, %p2658_p2 }
  0x2e   :  { %2666 = shalt.err (!%p2663_p4)
}
  0x2f   :  { %s2667_s3 = scalar_lea.vmem %s82_s11, 16  ;;  %s2671_s20 = scalar_lea.vmem %s82_s11, 32 }
  0x30   :  { %p2668_p5 = scmp.ne.s32.totalorder %s82_s11, %s2667_s3  ;;  %p2672_p6 = scmp.lt.s32.totalorder %s82_s11, %s82_s11 }
  0x31   :  { %p2673_p7 = scmp.lt.s32.totalorder %s2671_s20, %s2667_s3 }
  0x33   :  { %p2674_p8 = por %p2673_p7, %p2672_p6 }
  0x35   :  { %p2675_p9 = pnand %p2674_p8, %p2668_p5 }
  0x37   :  { %2678 = shalt.err (!%p2675_p9)
}
  0x38   :  { %84 = dma.hbm_to_vmem [thread:$0]  %s3238_s5, 16, %s82_s11, [#allocation14]  }
  0x39   :  { %s2679_s27 = scalar_lea.hbm %s3233_s0, 128 }
  0x3a   :  { %p2680_p10 = scmp.ne.s32.totalorder %s3233_s0, %s2679_s27  ;;  %p2683_p11 = scmp.lt.u32.totalorder %s2679_s27, %s3233_s0 }
  0x3c   :  { %p2685_p12 = pnand %p2683_p11, %p2680_p10 }
  0x3e   :  { %2688 = shalt.err (!%p2685_p12)
}
  0x3f   :  { %s2689_s9 = scalar_lea.vmem %s26_s13, 128  ;;  %p2694_p0 = scmp.lt.s32.totalorder %s26_s13, %s26_s13 }
  0x40   :  { %p2690_p13 = scmp.ne.s32.totalorder %s26_s13, %s2689_s9  ;;  %p2695_p1 = scmp.lt.s32.totalorder %s2689_s9, %s2689_s9 }
  0x42   :  { %p2696_p2 = por %p2695_p1, %p2694_p0 }
  0x44   :  { %p2697_p3 = pnand %p2696_p2, %p2690_p13 }
  0x46   :  { %2700 = shalt.err (!%p2697_p3)
}
  0x47   :  { %28 = dma.hbm_to_vmem [thread:$0]  %s3233_s0, 128, %s26_s13, [#allocation5]  }
  0x48   :  { %s2831_s11 = smov [#allocation9]   ;;  %s2832_s14 = smov [#allocation12]  }
  0x49   :  { %s47_s12 = sshll.u32 %s2831_s11, 4  ;;  %s68_s15 = sshll.u32 %s2832_s14, 4  ;;  %s48_s12 = int_to_ptr.vmem [resolvable:$true] %s47_s12  ;;  %s2935_s15 = int_to_ptr.vmem [resolvable:$true] %s68_s15 }
  0x4a   :  { %s2701_s19 = scalar_lea.hbm %s3235_s2, 256 }
  0x4b   :  { %p2702_p4 = scmp.ne.s32.totalorder %s3235_s2, %s2701_s19  ;;  %p2705_p5 = scmp.lt.u32.totalorder %s2701_s19, %s3235_s2 }
  0x4d   :  { %p2707_p6 = pnand %p2705_p5, %p2702_p4 }
  0x4f   :  { %2710 = shalt.err (!%p2707_p6)
}
  0x50   :  { %s2711_s0 = scalar_lea.vmem %s48_s12, 256  ;;  %p2716_p8 = scmp.lt.s32.totalorder %s48_s12, %s48_s12 }
  0x51   :  { %p2712_p7 = scmp.ne.s32.totalorder %s48_s12, %s2711_s0  ;;  %p2717_p9 = scmp.lt.s32.totalorder %s2711_s0, %s2711_s0 }
  0x53   :  { %p2718_p10 = por %p2717_p9, %p2716_p8 }
  0x55   :  { %p2719_p11 = pnand %p2718_p10, %p2712_p7 }
  0x57   :  { %2722 = shalt.err (!%p2719_p11)
}
  0x58   :  { %50 = dma.hbm_to_vmem [thread:$0]  %s3235_s2, 256, %s48_s12, [#allocation8]  }
  0x59   :  { %s2723_s26 = scalar_lea.hbm %s3237_s4, 8192 }
  0x5a   :  { %p2724_p12 = scmp.ne.s32.totalorder %s3237_s4, %s2723_s26  ;;  %p2727_p13 = scmp.lt.u32.totalorder %s2723_s26, %s3237_s4 }
  0x5c   :  { %p2729_p0 = pnand %p2727_p13, %p2724_p12 }
  0x5e   :  { %2732 = shalt.err (!%p2729_p0)
}
  0x5f   :  { %s2733_s30 = scalar_lea.vmem %s2935_s15, 8192  ;;  %p2738_p2 = scmp.lt.s32.totalorder %s2935_s15, %s2935_s15 }
  0x60   :  { %p2734_p1 = scmp.ne.s32.totalorder %s2935_s15, %s2733_s30  ;;  %p2739_p3 = scmp.lt.s32.totalorder %s2733_s30, %s2733_s30 }
  0x62   :  { %p2740_p4 = por %p2739_p3, %p2738_p2 }
  0x64   :  { %p2741_p5 = pnand %p2740_p4, %p2734_p1 }
  0x66   :  { %2744 = shalt.err (!%p2741_p5)
}
  0x67   :  { %s2833_s2 = smov 8   ;;  %s2834_s10 = smov [#allocation15]  }
  0x68   :  { %74 = dma.hbm_to_vmem [thread:$0]  %s3237_s4, 8192, %s2935_s15, [#allocation11], %s2825_s16, %s2825_s16, %s2833_s2  }
  0x69   :  { %s90_s11 = sshll.u32 %s2834_s10, 4  ;;  %s2835_s12 = smov [#allocation16]   ;;  %s91_s11 = int_to_ptr.vmem [resolvable:$true] %s90_s11 }
  0x6a   :  { %s103_s14 = sshll.u32 %s2835_s12, 4  ;;  %s2745_s19 = scalar_lea.hbm %s3239_s6, 512  ;;  %s104_s14 = int_to_ptr.vmem [resolvable:$true] %s103_s14 }
  0x6b   :  { %p2746_p6 = scmp.ne.s32.totalorder %s3239_s6, %s2745_s19  ;;  %p2749_p7 = scmp.lt.u32.totalorder %s2745_s19, %s3239_s6 }
  0x6d   :  { %p2751_p8 = pnand %p2749_p7, %p2746_p6 }
  0x6f   :  { %2754 = shalt.err (!%p2751_p8)
}
  0x70   :  { %s2755_s4 = scalar_lea.vmem %s91_s11, 512  ;;  %p2760_p10 = scmp.lt.s32.totalorder %s91_s11, %s91_s11 }
  0x71   :  { %p2756_p9 = scmp.ne.s32.totalorder %s91_s11, %s2755_s4  ;;  %p2761_p11 = scmp.lt.s32.totalorder %s2755_s4, %s2755_s4 }
  0x73   :  { %p2762_p12 = por %p2761_p11, %p2760_p10 }
  0x75   :  { %p2763_p13 = pnand %p2762_p12, %p2756_p9 }
  0x77   :  { %2766 = shalt.err (!%p2763_p13)
}
  0x78   :  { %96 = dma.hbm_to_vmem [thread:$0]  %s3239_s6, 512, %s91_s11, [#allocation14], %s2825_s16, %s2825_s16, %s2833_s2  }
  0x79   :  { %s2767_s24 = scalar_lea.hbm %s3240_s7, 16 }
  0x7a   :  { %p2768_p0 = scmp.ne.s32.totalorder %s3240_s7, %s2767_s24  ;;  %p2771_p1 = scmp.lt.u32.totalorder %s2767_s24, %s3240_s7 }
  0x7c   :  { %p2773_p2 = pnand %p2771_p1, %p2768_p0 }
  0x7e   :  { %2776 = shalt.err (!%p2773_p2)
}
  0x7f   :  { %s2777_s1 = scalar_lea.vmem %s104_s14, 16  ;;  %s2781_s28 = scalar_lea.vmem %s104_s14, 32 }
  0x80   :  { %p2778_p3 = scmp.ne.s32.totalorder %s104_s14, %s2777_s1  ;;  %p2782_p4 = scmp.lt.s32.totalorder %s104_s14, %s104_s14 }
  0x81   :  { %p2783_p5 = scmp.lt.s32.totalorder %s2781_s28, %s2777_s1 }
  0x83   :  { %p2784_p6 = por %p2783_p5, %p2782_p4 }
  0x85   :  { %p2785_p7 = pnand %p2784_p6, %p2778_p3 }
  0x87   :  { %2788 = shalt.err (!%p2785_p7)
}
  0x88   :  { %106 = dma.hbm_to_vmem [thread:$0]  %s3240_s7, 16, %s104_s14, [#allocation17]  }
  0x89   :  { %2811 = dma.done.wait [#allocation5], 128  }
  0x8a   :  { %2812 = vsyncadd [#allocation5], 4294967168 }
  0x8b   :  { %2813 = dma.done.wait [#allocation8], 16640  }
  0x8c   :  { %2814 = vsyncadd [#allocation8], 4294950656 }
  0x8d   :  { %2815 = dma.done.wait [#allocation11], 10240  }
  0x8e   :  { %2816 = vsyncadd [#allocation11], 4294957056 }
  0x8f   :  { %2817 = dma.done.wait [#allocation14], 528  }
  0x90   :  { %2818 = vsyncadd [#allocation14], 4294966768 }
  0x91   :  { %2819 = dma.done.wait [#allocation17], 16  }
  0x92   :  { %2820 = vsyncadd [#allocation17], 4294967280  ;;  %v2836_v0 = vmov 0.0   ;;  %v133_v1 = vld [vmem:[#allocation7 + $0x8] sm:$0xff]  ;;  %v132_v3 = vld [vmem:[#allocation7] sm:$0xff]  ;;  %vm344_vm0 = vcmask 523264  }
  0x93   :  { %412 = vmatprep.mubr.f32.mxu0 %v2836_v0  ;;  %483 = vmatprep.mubr.f32.mxu1 %v2836_v0  ;;  %v149_v2 = vld [vmem:[#allocation7 + $0x88] sm:$0xff]  ;;  %v148_v5 = vld [vmem:[#allocation7 + $0x80] sm:$0xff]  ;;  %v2996_v32 = vld [vmem:[#allocation4] sm:$0xff]  ;;  %s2837_s7 = smov 64   ;;  %vm1144_vm1 = vcmask 1048064   ;;  %vm2839_vm2 = vmmov 0  }
  0x94   :  { %v2171_v4 = vpack.c.bf16 %v149_v2, %v133_v1  ;;  %v165_v6 = vld [vmem:[#allocation7 + $0x108] sm:$0xff]  ;;  %v2173_v8 = vpack.c.bf16 %v148_v5, %v132_v3  ;;  %v164_v10 = vld [vmem:[#allocation7 + $0x100] sm:$0xff]  ;;  %vm1969_vm3 = vcmask 261120   ;;  %s2840_s30 = smov [#allocation18]  }
  0x95   :  { %v181_v7 = vld [vmem:[#allocation7 + $0x188] sm:$0xff]  ;;  %v180_v11 = vld [vmem:[#allocation7 + $0x180] sm:$0xff]  ;;  %s2054_s2 = sshll.u32 %s2840_s30, 4  ;;  %s2055_s2 = int_to_ptr.vmem [resolvable:$true] %s2054_s2 }
  0x96   :  { %v2175_v9 = vpack.c.bf16 %v181_v7, %v165_v6  ;;  %v197_v12 = vld [vmem:[#allocation7 + $0x208] sm:$0xff]  ;;  %2172 = vmatprep.subr.bf16.mxu0 %v2171_v4  ;;  %v2177_v14 = vpack.c.bf16 %v180_v11, %v164_v10  ;;  %v196_v16 = vld [vmem:[#allocation7 + $0x200] sm:$0xff]  ;;  %s2789_s9 = scalar_lea.vmem %s2055_s2, 128  ;;  %p2794_p9 = scmp.lt.s32.totalorder %s2055_s2, %s2055_s2 }
  0x97   :  { %v213_v13 = vld [vmem:[#allocation7 + $0x288] sm:$0xff]  ;;  %2174 = vmatpush1.bf16.msra.mxu0 %v2173_v8  ;;  %v212_v17 = vld [vmem:[#allocation7 + $0x280] sm:$0xff]  ;;  %p2790_p8 = scmp.ne.s32.totalorder %s2055_s2, %s2789_s9  ;;  %p2795_p10 = scmp.lt.s32.totalorder %s2789_s9, %s2789_s9 }
  0x98   :  { %2176 = vmatprep.subr.bf16.mxu0 %v2175_v9  ;;  %v2179_v15 = vpack.c.bf16 %v213_v13, %v197_v12  ;;  %v229_v18 = vld [vmem:[#allocation7 + $0x308] sm:$0xff]  ;;  %v2181_v20 = vpack.c.bf16 %v212_v17, %v196_v16  ;;  %v228_v22 = vld [vmem:[#allocation7 + $0x300] sm:$0xff] }
  0x99   :  { %v245_v19 = vld [vmem:[#allocation7 + $0x388] sm:$0xff]  ;;  %v244_v23 = vld [vmem:[#allocation7 + $0x380] sm:$0xff]  ;;  %p2796_p11 = por %p2795_p10, %p2794_p9 }
  0x9a   :  { %v2183_v21 = vpack.c.bf16 %v245_v19, %v229_v18  ;;  %v137_v24 = vld [vmem:[#allocation7 + $0x28] sm:$0xff]  ;;  %v2185_v26 = vpack.c.bf16 %v244_v23, %v228_v22  ;;  %v136_v28 = vld [vmem:[#allocation7 + $0x20] sm:$0xff] }
  0x9b   :  { %2178 = vmatpush1.bf16.msra.mxu0 %v2177_v14  ;;  %v153_v25 = vld [vmem:[#allocation7 + $0xa8] sm:$0xff]  ;;  %v152_v29 = vld [vmem:[#allocation7 + $0xa0] sm:$0xff]  ;;  %p2797_p12 = pnand %p2796_p11, %p2790_p8 }
  0x9c   :  { %2180 = vmatprep.subr.bf16.mxu0 %v2179_v15  ;;  %v2203_v27 = vpack.c.bf16 %v153_v25, %v137_v24  ;;  %v169_v30 = vld [vmem:[#allocation7 + $0x128] sm:$0xff]  ;;  %v2205_v33 = vpack.c.bf16 %v152_v29, %v136_v28  ;;  %v168_v35 = vld [vmem:[#allocation7 + $0x120] sm:$0xff] }
  0x9d   :  { %v185_v31 = vld [vmem:[#allocation7 + $0x1a8] sm:$0xff]  ;;  %v184_v36 = vld [vmem:[#allocation7 + $0x1a0] sm:$0xff] }
  0x9e   :  { %v2207_v34 = vpack.c.bf16 %v185_v31, %v169_v30  ;;  %v201_v37 = vld [vmem:[#allocation7 + $0x228] sm:$0xff]  ;;  %v2209_v39 = vpack.c.bf16 %v184_v36, %v168_v35  ;;  %v200_v41 = vld [vmem:[#allocation7 + $0x220] sm:$0xff]  ;;  %v933_v35 = vld [vmem:[#allocation10 + $0x8] sm:$0xff] }
  0x9f   :  { %2182 = vmatpush1.bf16.msra.mxu0 %v2181_v20  ;;  %v217_v38 = vld [vmem:[#allocation7 + $0x2a8] sm:$0xff]  ;;  %v216_v42 = vld [vmem:[#allocation7 + $0x2a0] sm:$0xff] }
  0xa0   :  { %2184 = vmatprep.subr.bf16.mxu0 %v2183_v21  ;;  %v2211_v40 = vpack.c.bf16 %v217_v38, %v201_v37  ;;  %v233_v43 = vld [vmem:[#allocation7 + $0x328] sm:$0xff]  ;;  %v2213_v45 = vpack.c.bf16 %v216_v42, %v200_v41  ;;  %v232_v47 = vld [vmem:[#allocation7 + $0x320] sm:$0xff]  ;;  %v937_v41 = vld [vmem:[#allocation10 + $0x28] sm:$0xff] }
  0xa1   :  { %v249_v44 = vld [vmem:[#allocation7 + $0x3a8] sm:$0xff]  ;;  %v248_v48 = vld [vmem:[#allocation7 + $0x3a0] sm:$0xff] }
  0xa2   :  { %v2215_v46 = vpack.c.bf16 %v249_v44, %v233_v43  ;;  %v141_v49 = vld [vmem:[#allocation7 + $0x48] sm:$0xff]  ;;  %v2217_v51 = vpack.c.bf16 %v248_v48, %v232_v47  ;;  %v140_v53 = vld [vmem:[#allocation7 + $0x40] sm:$0xff]  ;;  %v941_v47 = vld [vmem:[#allocation10 + $0x48] sm:$0xff] }
  0xa3   :  { %2186 = vmatpush1.bf16.msra.mxu0 %v2185_v26  ;;  %v157_v50 = vld [vmem:[#allocation7 + $0xc8] sm:$0xff]  ;;  %v156_v54 = vld [vmem:[#allocation7 + $0xc0] sm:$0xff] }
  0xa4   :  { %2204 = vmatprep.subr.bf16.mxu0 %v2203_v27  ;;  %v2235_v52 = vpack.c.bf16 %v157_v50, %v141_v49  ;;  %v173_v55 = vld [vmem:[#allocation7 + $0x148] sm:$0xff]  ;;  %v2237_v57 = vpack.c.bf16 %v156_v54, %v140_v53  ;;  %v172_v59 = vld [vmem:[#allocation7 + $0x140] sm:$0xff]  ;;  %v945_v53 = vld [vmem:[#allocation10 + $0x68] sm:$0xff] }
  0xa5   :  { %v189_v56 = vld [vmem:[#allocation7 + $0x1c8] sm:$0xff]  ;;  %v188_v60 = vld [vmem:[#allocation7 + $0x1c0] sm:$0xff] }
  0xa6   :  { %2067 = vmatmul.mubr.msk.f32.vlgmr.msra.gmra.mrb[0].mxu0 %vm344_vm0, %v2996_v32  ;;  %v2239_v58 = vpack.c.bf16 %v189_v56, %v173_v55  ;;  %v205_v61 = vld [vmem:[#allocation7 + $0x248] sm:$0xff]  ;;  %v2241_v63 = vpack.c.bf16 %v188_v60, %v172_v59  ;;  %v204_v2 = vld [vmem:[#allocation7 + $0x240] sm:$0xff]  ;;  %v264_v60 = vlaneseq }
  0xa7   :  { %2206 = vmatpush1.bf16.msra.mxu0 %v2205_v33  ;;  %554 = vmatprep.mubr.f32.mxu0 %v2836_v0  ;;  %v221_v62 = vld [vmem:[#allocation7 + $0x2c8] sm:$0xff]  ;;  %v220_v3 = vld [vmem:[#allocation7 + $0x2c0] sm:$0xff] }
  0xa8   :  { %2208 = vmatprep.subr.bf16.mxu0 %v2207_v34  ;;  %v2243_v1 = vpack.c.bf16 %v221_v62, %v205_v61  ;;  %v237_v4 = vld [vmem:[#allocation7 + $0x348] sm:$0xff]  ;;  %v2245_v6 = vpack.c.bf16 %v220_v3, %v204_v2  ;;  %v236_v8 = vld [vmem:[#allocation7 + $0x340] sm:$0xff]  ;;  %v3045_v61 = vshrl.u32 %v264_v60, 7 }
  0xa9   :  { %v253_v5 = vld [vmem:[#allocation7 + $0x3c8] sm:$0xff]  ;;  %v252_v9 = vld [vmem:[#allocation7 + $0x3c0] sm:$0xff] }
  0xaa   :  { %v2247_v7 = vpack.c.bf16 %v253_v5, %v237_v4  ;;  %v145_v10 = vld [vmem:[#allocation7 + $0x68] sm:$0xff]  ;;  %v2249_v12 = vpack.c.bf16 %v252_v9, %v236_v8  ;;  %v144_v14 = vld [vmem:[#allocation7 + $0x60] sm:$0xff]  ;;  %v266_v62 = vsub.s32 0, %v3045_v61  ;;  %v270_v2 = vsub.s32 1, %v3045_v61 }
  0xab   :  { %2210 = vmatpush1.bf16.msra.mxu0 %v2209_v39  ;;  %v161_v11 = vld [vmem:[#allocation7 + $0xe8] sm:$0xff]  ;;  %v160_v15 = vld [vmem:[#allocation7 + $0xe0] sm:$0xff]  ;;  %v932_v39 = vld [vmem:[#allocation10] sm:$0xff] }
  0xac   :  { %2212 = vmatprep.subr.bf16.mxu0 %v2211_v40  ;;  %v2267_v13 = vpack.c.bf16 %v161_v11, %v145_v10  ;;  %v177_v16 = vld [vmem:[#allocation7 + $0x168] sm:$0xff]  ;;  %v2269_v18 = vpack.c.bf16 %v160_v15, %v144_v14  ;;  %v176_v20 = vld [vmem:[#allocation7 + $0x160] sm:$0xff]  ;;  %v135_v14 = vld [vmem:[#allocation7 + $0x18] sm:$0xff] }
  0xad   :  { %v193_v17 = vld [vmem:[#allocation7 + $0x1e8] sm:$0xff]  ;;  %v192_v21 = vld [vmem:[#allocation7 + $0x1e0] sm:$0xff]  ;;  %v151_v15 = vld [vmem:[#allocation7 + $0x98] sm:$0xff] }
  0xae   :  { %v2271_v19 = vpack.c.bf16 %v193_v17, %v177_v16  ;;  %v209_v22 = vld [vmem:[#allocation7 + $0x268] sm:$0xff]  ;;  %v2273_v24 = vpack.c.bf16 %v192_v21, %v176_v20  ;;  %v208_v26 = vld [vmem:[#allocation7 + $0x260] sm:$0xff]  ;;  %v134_v16 = vld [vmem:[#allocation7 + $0x10] sm:$0xff]  ;;  %v2187_v17 = vpack.c.bf16 %v151_v15, %v135_v14 }
  0xaf   :  { %2214 = vmatpush1.bf16.msra.mxu0 %v2213_v45  ;;  %v225_v23 = vld [vmem:[#allocation7 + $0x2e8] sm:$0xff]  ;;  %v224_v27 = vld [vmem:[#allocation7 + $0x2e0] sm:$0xff]  ;;  %v936_v45 = vld [vmem:[#allocation10 + $0x20] sm:$0xff] }
  0xb0   :  { %2216 = vmatprep.subr.bf16.mxu0 %v2215_v46  ;;  %v2275_v25 = vpack.c.bf16 %v225_v23, %v209_v22  ;;  %v241_v28 = vld [vmem:[#allocation7 + $0x368] sm:$0xff]  ;;  %v2277_v30 = vpack.c.bf16 %v224_v27, %v208_v26  ;;  %v240_v33 = vld [vmem:[#allocation7 + $0x360] sm:$0xff]  ;;  %v183_v20 = vld [vmem:[#allocation7 + $0x198] sm:$0xff]  ;;  %2188 = vmatprep.subr.bf16.mxu1 %v2187_v17 }
  0xb1   :  { %v257_v29 = vld [vmem:[#allocation7 + $0x3e8] sm:$0xff]  ;;  %v256_v34 = vld [vmem:[#allocation7 + $0x3e0] sm:$0xff]  ;;  %v166_v23 = vld [vmem:[#allocation7 + $0x110] sm:$0xff] }
  0xb2   :  { %v2279_v31 = vpack.c.bf16 %v257_v29, %v241_v28  ;;  %v935_v36 = vld [vmem:[#allocation10 + $0x18] sm:$0xff]  ;;  %v2281_v37 = vpack.c.bf16 %v256_v34, %v240_v33  ;;  %v934_v40 = vld [vmem:[#allocation10 + $0x10] sm:$0xff]  ;;  %v215_v26 = vld [vmem:[#allocation7 + $0x298] sm:$0xff] }
  0xb3   :  { %2218 = vmatpush1.bf16.msra.mxu0 %v2217_v51  ;;  %v3007_v38 = vpack.c.bf16 %v935_v36, %v933_v35  ;;  %v939_v42 = vld [vmem:[#allocation10 + $0x38] sm:$0xff]  ;;  %v3009_v43 = vpack.c.bf16 %v934_v40, %v932_v39  ;;  %v938_v46 = vld [vmem:[#allocation10 + $0x30] sm:$0xff]  ;;  %v940_v51 = vld [vmem:[#allocation10 + $0x40] sm:$0xff] }
  0xb4   :  { %2236 = vmatprep.subr.bf16.mxu0 %v2235_v52  ;;  %v3012_v44 = vpack.c.bf16 %v939_v42, %v937_v41  ;;  %v943_v48 = vld [vmem:[#allocation10 + $0x58] sm:$0xff]  ;;  %v3017_v49 = vpack.c.bf16 %v938_v46, %v936_v45  ;;  %v942_v52 = vld [vmem:[#allocation10 + $0x50] sm:$0xff]  ;;  %v198_v29 = vld [vmem:[#allocation7 + $0x210] sm:$0xff] }
  0xb5   :  { %v3021_v50 = vpack.c.bf16 %v943_v48, %v941_v47  ;;  %v947_v54 = vld [vmem:[#allocation10 + $0x78] sm:$0xff]  ;;  %v3024_v55 = vpack.c.bf16 %v942_v52, %v940_v51  ;;  %v247_v33 = vld [vmem:[#allocation7 + $0x398] sm:$0xff]  ;;  %v230_v36 = vld [vmem:[#allocation7 + $0x310] sm:$0xff] }
  0xb6   :  { %2069 = vmatmul.mubr.msk.f32.vlgmr.msra.gmra.mrb[2].mxu0 %vm344_vm0, %v2996_v32  ;;  %v3027_v56 = vpack.c.bf16 %v947_v54, %v945_v53  ;;  %v139_v39 = vld [vmem:[#allocation7 + $0x38] sm:$0xff]  ;;  %v138_v45 = vld [vmem:[#allocation7 + $0x30] sm:$0xff] }
  0xb7   :  { %2238 = vmatpush1.bf16.msra.mxu0 %v2237_v57  ;;  %696 = vmatprep.mubr.f32.mxu0 %v2836_v0  ;;  %v944_v57 = vld [vmem:[#allocation10 + $0x60] sm:$0xff]  ;;  %v155_v40 = vld [vmem:[#allocation7 + $0xb8] sm:$0xff] }
  0xb8   :  { %2240 = vmatprep.subr.bf16.mxu0 %v2239_v58  ;;  %v946_v58 = vld [vmem:[#allocation10 + $0x70] sm:$0xff]  ;;  %v2219_v42 = vpack.c.bf16 %v155_v40, %v139_v39  ;;  %v154_v46 = vld [vmem:[#allocation7 + $0xb0] sm:$0xff]  ;;  %v171_v47 = vld [vmem:[#allocation7 + $0x138] sm:$0xff] }
  0xb9   :  { %v3030_v59 = vpack.c.bf16 %v946_v58, %v944_v57  ;;  %v187_v48 = vld [vmem:[#allocation7 + $0x1b8] sm:$0xff]  ;;  %v2221_v51 = vpack.c.bf16 %v154_v46, %v138_v45  ;;  %v170_v53 = vld [vmem:[#allocation7 + $0x130] sm:$0xff] }
  0xba   :  { %v2223_v52 = vpack.c.bf16 %v187_v48, %v171_v47  ;;  %v186_v54 = vld [vmem:[#allocation7 + $0x1b0] sm:$0xff]  ;;  %v203_v57 = vld [vmem:[#allocation7 + $0x238] sm:$0xff] }
  0xbb   :  { %2242 = vmatpush1.bf16.msra.mxu0 %v2241_v63  ;;  %v3048_v63 = vld [vmem:[#allocation9] sm:$0xff]  ;;  %v219_v58 = vld [vmem:[#allocation7 + $0x2b8] sm:$0xff]  ;;  %v2225_v60 = vpack.c.bf16 %v186_v54, %v170_v53  ;;  %v142_v17 = vld [vmem:[#allocation7 + $0x50] sm:$0xff] }
  0xbc   :  { %2244 = vmatprep.subr.bf16.mxu0 %v2243_v1  ;;  %v267_v1 = vrot.slane %v3048_v63, %v266_v62  ;;  %v271_v5 = vrot.slane %v3048_v63, %v270_v2  ;;  %v159_v14 = vld [vmem:[#allocation7 + $0xd8] sm:$0xff]  ;;  %v146_v45 = vld [vmem:[#allocation7 + $0x70] sm:$0xff] }
  0xbd   :  { %v147_v39 = vld [vmem:[#allocation7 + $0x78] sm:$0xff]  ;;  %v162_v46 = vld [vmem:[#allocation7 + $0xf0] sm:$0xff] }
  0xbe   :  { %v163_v40 = vld [vmem:[#allocation7 + $0xf8] sm:$0xff]  ;;  %v178_v53 = vld [vmem:[#allocation7 + $0x170] sm:$0xff] }
  0xbf   :  { %2246 = vmatpush1.bf16.msra.mxu0 %v2245_v6  ;;  %v179_v47 = vld [vmem:[#allocation7 + $0x178] sm:$0xff]  ;;  %v194_v54 = vld [vmem:[#allocation7 + $0x1f0] sm:$0xff] }
  0xc0   :  { %2248 = vmatprep.subr.bf16.mxu0 %v2247_v7  ;;  %v195_v48 = vld [vmem:[#allocation7 + $0x1f8] sm:$0xff] }
  0xc3   :  { %2250 = vmatpush1.bf16.msra.mxu0 %v2249_v12 }
  0xc4   :  { %2268 = vmatprep.subr.bf16.mxu0 %v2267_v13 }
  0xc6   :  { %2071 = vmatmul.mubr.msk.f32.vlgmr.msra.gmra.mrb[4].mxu0 %vm344_vm0, %v2996_v32 }
  0xc7   :  { %2270 = vmatpush1.bf16.msra.mxu0 %v2269_v18  ;;  %838 = vmatprep.mubr.f32.mxu0 %v2836_v0  ;;  %v150_v18 = vld [vmem:[#allocation7 + $0x90] sm:$0xff] }
  0xc8   :  { %2272 = vmatprep.subr.bf16.mxu0 %v2271_v19  ;;  %v167_v19 = vld [vmem:[#allocation7 + $0x118] sm:$0xff]  ;;  %v2189_v21 = vpack.c.bf16 %v150_v18, %v134_v16  ;;  %v158_v18 = vld [vmem:[#allocation7 + $0xd0] sm:$0xff] }
  0xc9   :  { %v2191_v22 = vpack.c.bf16 %v183_v20, %v167_v19  ;;  %v175_v19 = vld [vmem:[#allocation7 + $0x158] sm:$0xff] }
  0xca   :  { %2190 = vmatpush1.bf16.msra.mxu1 %v2189_v21  ;;  %v191_v20 = vld [vmem:[#allocation7 + $0x1d8] sm:$0xff]  ;;  %v2253_v21 = vpack.c.bf16 %v158_v18, %v142_v17 }
  0xcb   :  { %2274 = vmatpush1.bf16.msra.mxu0 %v2273_v24  ;;  %v182_v24 = vld [vmem:[#allocation7 + $0x190] sm:$0xff]  ;;  %2192 = vmatprep.subr.bf16.mxu1 %v2191_v22  ;;  %v2255_v22 = vpack.c.bf16 %v191_v20, %v175_v19 }
  0xcc   :  { %2276 = vmatprep.subr.bf16.mxu0 %v2275_v25  ;;  %v199_v25 = vld [vmem:[#allocation7 + $0x218] sm:$0xff]  ;;  %v2193_v27 = vpack.c.bf16 %v182_v24, %v166_v23  ;;  %v174_v23 = vld [vmem:[#allocation7 + $0x150] sm:$0xff] }
  0xcd   :  { %v2195_v28 = vpack.c.bf16 %v215_v26, %v199_v25  ;;  %v190_v24 = vld [vmem:[#allocation7 + $0x1d0] sm:$0xff]  ;;  %v207_v25 = vld [vmem:[#allocation7 + $0x258] sm:$0xff] }
  0xce   :  { %2194 = vmatpush1.bf16.msra.mxu1 %v2193_v27  ;;  %v223_v26 = vld [vmem:[#allocation7 + $0x2d8] sm:$0xff]  ;;  %v2257_v27 = vpack.c.bf16 %v190_v24, %v174_v23  ;;  %v278_v23 = vsub.s32 3, %v3045_v61 }
  0xcf   :  { %2278 = vmatpush1.bf16.msra.mxu0 %v2277_v30  ;;  %v214_v30 = vld [vmem:[#allocation7 + $0x290] sm:$0xff]  ;;  %2196 = vmatprep.subr.bf16.mxu1 %v2195_v28  ;;  %v2259_v28 = vpack.c.bf16 %v223_v26, %v207_v25 }
  0xd0   :  { %2280 = vmatprep.subr.bf16.mxu0 %v2279_v31  ;;  %v231_v31 = vld [vmem:[#allocation7 + $0x318] sm:$0xff]  ;;  %v2197_v34 = vpack.c.bf16 %v214_v30, %v198_v29  ;;  %v206_v29 = vld [vmem:[#allocation7 + $0x250] sm:$0xff]  ;;  %v279_v26 = vrot.slane %v3048_v63, %v278_v23 }
  0xd1   :  { %v2199_v35 = vpack.c.bf16 %v247_v33, %v231_v31  ;;  %v222_v30 = vld [vmem:[#allocation7 + $0x2d0] sm:$0xff]  ;;  %v239_v31 = vld [vmem:[#allocation7 + $0x358] sm:$0xff] }
  0xd2   :  { %2198 = vmatpush1.bf16.msra.mxu1 %v2197_v34  ;;  %v255_v33 = vld [vmem:[#allocation7 + $0x3d8] sm:$0xff]  ;;  %v2261_v34 = vpack.c.bf16 %v222_v30, %v206_v29 }
  0xd3   :  { %2282 = vmatpush1.bf16.msra.mxu0 %v2281_v37  ;;  %v246_v37 = vld [vmem:[#allocation7 + $0x390] sm:$0xff]  ;;  %2200 = vmatprep.subr.bf16.mxu1 %v2199_v35  ;;  %v2263_v35 = vpack.c.bf16 %v255_v33, %v239_v31 }
  0xd4   :  { %2300 = vmatprep.subr.bf16.mxu0 %v3007_v38  ;;  %v2201_v41 = vpack.c.bf16 %v246_v37, %v230_v36  ;;  %v238_v36 = vld [vmem:[#allocation7 + $0x350] sm:$0xff] }
  0xd5   :  { %v254_v37 = vld [vmem:[#allocation7 + $0x3d0] sm:$0xff] }
  0xd6   :  { %2073 = vmatmul.mubr.msk.f32.vlgmr.msra.gmra.mrb[6].mxu0 %vm344_vm0, %v2996_v32  ;;  %2202 = vmatpush1.bf16.msra.mxu1 %v2201_v41  ;;  %v2265_v41 = vpack.c.bf16 %v254_v37, %v238_v36 }
  0xd7   :  { %2302 = vmatpush1.bf16.msra.mxu0 %v3009_v43  ;;  %1017 = vmatprep.mubr.f32.mxu0 %v2836_v0 }
  0xd8   :  { %2304 = vmatprep.subr.bf16.mxu0 %v3012_v44  ;;  %2220 = vmatprep.subr.bf16.mxu1 %v2219_v42  ;;  %v2283_v42 = vpack.c.bf16 %v163_v40, %v147_v39 }
  0xd9   :  { %2068 = vmatmul.mubr.msk.f32.vlgmr.msra.gmra.mrb[0].mxu1 %vm344_vm0, %v2996_v32 }
  0xda   :  { %2222 = vmatpush1.bf16.msra.mxu1 %v2221_v51  ;;  %625 = vmatprep.mubr.f32.mxu1 %v2836_v0  ;;  %v2285_v51 = vpack.c.bf16 %v162_v46, %v146_v45 }
  0xdb   :  { %2306 = vmatpush1.bf16.msra.mxu0 %v3017_v49  ;;  %2224 = vmatprep.subr.bf16.mxu1 %v2223_v52  ;;  %v2287_v52 = vpack.c.bf16 %v195_v48, %v179_v47 }
  0xdc   :  { %2308 = vmatprep.subr.bf16.mxu0 %v3021_v50 }
  0xde   :  { %2226 = vmatpush1.bf16.msra.mxu1 %v2225_v60  ;;  %v2289_v60 = vpack.c.bf16 %v194_v54, %v178_v53  ;;  %v286_v53 = vsub.s32 5, %v3045_v61 }
  0xdf   :  { %2310 = vmatpush1.bf16.msra.mxu0 %v3024_v55 }
  0xe0   :  { %2312 = vmatprep.subr.bf16.mxu0 %v3027_v56 }
  0xe3   :  { %2314 = vmatpush1.bf16.msra.mxu0 %v3030_v59 }
  0xe4   :  { %2332 = vmatprep.subr.bf16.mxu0 %v3007_v38 }
  0xe6   :  { %1018 = vmatmul.mubr.f32.vlgmr.msra.gmra.mrb[0].mxu0 %v2836_v0 }
  0xe7   :  { %2334 = vmatpush1.bf16.msra.mxu0 %v3009_v43  ;;  %1217 = vmatprep.mubr.f32.mxu0 %v2836_v0 }
  0xe8   :  { %2336 = vmatprep.subr.bf16.mxu0 %v3012_v44 }
  0xeb   :  { %2338 = vmatpush1.bf16.msra.mxu0 %v3017_v49 }
  0xec   :  { %2340 = vmatprep.subr.bf16.mxu0 %v3021_v50 }
  0xef   :  { %2342 = vmatpush1.bf16.msra.mxu0 %v3024_v55 }
  0xf0   :  { %2344 = vmatprep.subr.bf16.mxu0 %v3027_v56 }
  0xf3   :  { %2346 = vmatpush1.bf16.msra.mxu0 %v3030_v59 }
  0xf4   :  { %2364 = vmatprep.subr.bf16.mxu0 %v3007_v38 }
 0x1b9   :  { %v1019_v3 = vpop.f32.mrb[0].mxu0 }
 0x1ba   :  { %v2497_v4 = vadd.f32 %v1019_v3, %v267_v1  ;;  %v1021_v6 = vpop.f32.mrb[1].mxu0  ;;  %v2227_v1 = vpack.c.bf16 %v219_v58, %v203_v57  ;;  %v202_v3 = vld [vmem:[#allocation7 + $0x230] sm:$0xff]  ;;  %v211_v57 = vld [vmem:[#allocation7 + $0x278] sm:$0xff] }
 0x1bb   :  { %v3057_v8 = vadd.f32 %v1021_v6, %v271_v5  ;;  %v235_v5 = vld [vmem:[#allocation7 + $0x338] sm:$0xff] }
 0x1bc   :  { %v1026_v7 = vmul.f32 0.5, %v2497_v4  ;;  %v218_v4 = vld [vmem:[#allocation7 + $0x2b0] sm:$0xff]  ;;  %v251_v6 = vld [vmem:[#allocation7 + $0x3b8] sm:$0xff]  ;;  %2228 = vmatprep.subr.bf16.mxu1 %v2227_v1 }
 0x1bd   :  { %v227_v58 = vld [vmem:[#allocation7 + $0x2f8] sm:$0xff] }
 0x1be   :  { %2547 = vtanh.f32 %v1026_v7  ;;  %v2229_v7 = vpack.c.bf16 %v218_v4, %v202_v3  ;;  %v2291_v1 = vpack.c.bf16 %v227_v58, %v211_v57  ;;  %v210_v3 = vld [vmem:[#allocation7 + $0x270] sm:$0xff]  ;;  %v287_v58 = vrot.slane %v3048_v63, %v286_v53 }
 0x1bf   :  { %2549 = vtanh.f32 %v3057_v8  ;;  %v226_v4 = vld [vmem:[#allocation7 + $0x2f0] sm:$0xff] }
 0x1c0   :  { %2230 = vmatpush1.bf16.msra.mxu1 %v2229_v7  ;;  %v2293_v7 = vpack.c.bf16 %v226_v4, %v210_v3 }
 0x1c8   :  { %v2548_v9 = vpop.eup %2547 }
 0x1c9   :  { %v1028_v10 = vmul.f32 0.5, %v2548_v9  ;;  %v2550_v12 = vpop.eup %2549  ;;  %v2231_v9 = vpack.c.bf16 %v251_v6, %v235_v5  ;;  %v243_v5 = vld [vmem:[#allocation7 + $0x378] sm:$0xff] }
 0x1ca   :  { %v259_v6 = vld [vmem:[#allocation7 + $0x3f8] sm:$0xff] }
 0x1cb   :  { %v3060_v11 = vadd.f32 0.5, %v1028_v10  ;;  %v234_v10 = vld [vmem:[#allocation7 + $0x330] sm:$0xff]  ;;  %2232 = vmatprep.subr.bf16.mxu1 %v2231_v9  ;;  %v2295_v9 = vpack.c.bf16 %v259_v6, %v243_v5 }
 0x1cd   :  { %v1036_v13 = vmul.f32 %v2550_v12, %v3060_v11  ;;  %v250_v12 = vld [vmem:[#allocation7 + $0x3b0] sm:$0xff] }
 0x1ce   :  { %v2233_v15 = vpack.c.bf16 %v250_v12, %v234_v10  ;;  %v242_v10 = vld [vmem:[#allocation7 + $0x370] sm:$0xff] }
 0x1cf   :  { %1038 = vrot.lane.b32.xlu0 %v1036_v13, %s2837_s7  ;;  %v143_v13 = vld [vmem:[#allocation7 + $0x58] sm:$0xff]  ;;  %v258_v12 = vld [vmem:[#allocation7 + $0x3f0] sm:$0xff] }
 0x1d0   :  { %v2251_v16 = vpack.c.bf16 %v159_v14, %v143_v13  ;;  %2234 = vmatpush1.bf16.msra.mxu1 %v2233_v15  ;;  %v2297_v13 = vpack.c.bf16 %v258_v12, %v242_v10  ;;  %v1035_v14 = vmul.f32 0.0, %v3060_v11 }
 0x1d2   :  { %2252 = vmatprep.subr.bf16.mxu1 %v2251_v16 }
 0x1d3   :  { %2070 = vmatmul.mubr.msk.f32.vlgmr.msra.gmra.mrb[2].mxu1 %vm344_vm0, %v2996_v32 }
 0x1d4   :  { %2254 = vmatpush1.bf16.msra.mxu1 %v2253_v21  ;;  %767 = vmatprep.mubr.f32.mxu1 %v2836_v0 }
 0x1d5   :  { %2256 = vmatprep.subr.bf16.mxu1 %v2255_v22 }
 0x1d8   :  { %2258 = vmatpush1.bf16.msra.mxu1 %v2257_v27 }
 0x1d9   :  { %2260 = vmatprep.subr.bf16.mxu1 %v2259_v28 }
 0x1dc   :  { %2262 = vmatpush1.bf16.msra.mxu1 %v2261_v34 }
 0x1dd   :  { %2264 = vmatprep.subr.bf16.mxu1 %v2263_v35 }
 0x1e0   :  { %2266 = vmatpush1.bf16.msra.mxu1 %v2265_v41 }
 0x1e1   :  { %2284 = vmatprep.subr.bf16.mxu1 %v2283_v42 }
 0x1e3   :  { %2072 = vmatmul.mubr.msk.f32.vlgmr.msra.gmra.mrb[4].mxu1 %vm344_vm0, %v2996_v32 }
 0x1e4   :  { %2286 = vmatpush1.bf16.msra.mxu1 %v2285_v51  ;;  %909 = vmatprep.mubr.f32.mxu1 %v2836_v0  ;;  %v282_v51 = vsub.s32 4, %v3045_v61 }
 0x1e5   :  { %2288 = vmatprep.subr.bf16.mxu1 %v2287_v52 }
 0x1e6   :  { %v283_v52 = vrot.slane %v3048_v63, %v282_v51 }
 0x1e8   :  { %2290 = vmatpush1.bf16.msra.mxu1 %v2289_v60 }
 0x1e9   :  { %2292 = vmatprep.subr.bf16.mxu1 %v2291_v1 }
 0x1ec   :  { %2294 = vmatpush1.bf16.msra.mxu1 %v2293_v7 }
 0x1ed   :  { %2296 = vmatprep.subr.bf16.mxu1 %v2295_v9 }
 0x1f0   :  { %2298 = vmatpush1.bf16.msra.mxu1 %v2297_v13 }
 0x1f1   :  { %2316 = vmatprep.subr.bf16.mxu1 %v3007_v38 }
 0x1f3   :  { %2074 = vmatmul.mubr.msk.f32.vlgmr.msra.gmra.mrb[6].mxu1 %vm344_vm0, %v2996_v32  ;;  %v1031_v32 = vmul.f32 0.5, %v3057_v8  ;;  %v274_v8 = vsub.s32 2, %v3045_v61 }
 0x1f4   :  { %2318 = vmatpush1.bf16.msra.mxu1 %v3009_v43  ;;  %1117 = vmatprep.mubr.f32.mxu1 %v2836_v0 }
 0x1f5   :  { %2320 = vmatprep.subr.bf16.mxu1 %v3012_v44  ;;  %2551 = vtanh.f32 %v1031_v32  ;;  %v275_v11 = vrot.slane %v3048_v63, %v274_v8 }
 0x1f8   :  { %2322 = vmatpush1.bf16.msra.mxu1 %v3017_v49 }
 0x1f9   :  { %2324 = vmatprep.subr.bf16.mxu1 %v3021_v50 }
 0x1fc   :  { %2326 = vmatpush1.bf16.msra.mxu1 %v3024_v55 }
 0x1fd   :  { %2328 = vmatprep.subr.bf16.mxu1 %v3027_v56 }
 0x1ff   :  { %v2552_v17 = vpop.eup %2551 }
 0x200   :  { %2330 = vmatpush1.bf16.msra.mxu1 %v3030_v59  ;;  %v1033_v18 = vmul.f32 0.5, %v2552_v17 }
 0x201   :  { %2348 = vmatprep.subr.bf16.mxu1 %v3007_v38 }
 0x202   :  { %v1034_v19 = vadd.f32 0.5, %v1033_v18 }
 0x241   :  { %v1039_v15 = vpop.permute.xlu0 %1038 }
 0x242   :  { %v1041_v16 = vadd.f32 %v1039_v15, %v1035_v14 }
 0x244   :  { %2553 = vtanh.f32 %v1041_v16 }
 0x24e   :  { %v2554_v20 = vpop.eup %2553 }
 0x24f   :  { %v1043_v21 = vmul.f32 %v2554_v20, %v1034_v19  ;;  %v290_v20 = vsub.s32 6, %v3045_v61 }
 0x251   :  { %1045 = vrot.lane.b32.xlu0 %v1043_v21, %s2837_s7  ;;  %v291_v21 = vrot.slane %v3048_v63, %v290_v20 }
 0x2c3   :  { %v1046_v22 = vpop.permute.xlu0 %1045 }
 0x2c4   :  { %1048 = vst.msk [vmem:[#allocation3] sm:$0xff] %vm344_vm0, %v1046_v22  ;;  %2075 = vmatmul.mubr.msk.f32.vlgmr.msra.gmra.mrb[0].mxu1 %vm344_vm0, %v1046_v22  ;;  %v294_v22 = vsub.s32 7, %v3045_v61  ;;  %v1786_v61 = vld [vmem:[#allocation12 + $0x138] sm:$0xff] }
 0x2c5   :  { %2350 = vmatpush1.bf16.msra.mxu1 %v3009_v43  ;;  %1317 = vmatprep.mubr.f32.mxu1 %v2836_v0 }
 0x2c6   :  { %2352 = vmatprep.subr.bf16.mxu1 %v3012_v44 }
 0x2c9   :  { %2354 = vmatpush1.bf16.msra.mxu1 %v3017_v49 }
 0x2ca   :  { %2356 = vmatprep.subr.bf16.mxu1 %v3021_v50 }
 0x2cd   :  { %2358 = vmatpush1.bf16.msra.mxu1 %v3024_v55 }
 0x2ce   :  { %2360 = vmatprep.subr.bf16.mxu1 %v3027_v56 }
 0x2d1   :  { %2362 = vmatpush1.bf16.msra.mxu1 %v3030_v59 }
 0x2d2   :  { %2380 = vmatprep.subr.bf16.mxu1 %v3007_v38 }
 0x397   :  { %v1119_v24 = vpop.f32.mrb[0].mxu1 }
 0x398   :  { %v2499_v25 = vadd.f32 %v1119_v24, %v275_v11  ;;  %v1121_v27 = vpop.f32.mrb[1].mxu1 }
 0x399   :  { %v2500_v29 = vadd.f32 %v1121_v27, %v279_v26 }
 0x39a   :  { %v1126_v28 = vmul.f32 0.5, %v2499_v25  ;;  %v295_v25 = vrot.slane %v3048_v63, %v294_v22 }
 0x39b   :  { %v1131_v36 = vmul.f32 0.5, %v2500_v29 }
 0x39c   :  { %2555 = vtanh.f32 %v1126_v28 }
 0x39d   :  { %2557 = vtanh.f32 %v2500_v29 }
 0x39e   :  { %2559 = vtanh.f32 %v1131_v36 }
 0x3a6   :  { %v2556_v30 = vpop.eup %2555 }
 0x3a7   :  { %v1128_v31 = vmul.f32 0.5, %v2556_v30  ;;  %v2558_v34 = vpop.eup %2557 }
 0x3a8   :  { %v2560_v41 = vpop.eup %2559 }
 0x3a9   :  { %v1129_v33 = vadd.f32 0.5, %v1128_v31  ;;  %v1133_v42 = vmul.f32 0.5, %v2560_v41 }
 0x3ab   :  { %v1136_v35 = vmul.f32 %v2558_v34, %v1129_v33  ;;  %v1135_v37 = vmul.f32 %v1129_v33, %v1041_v16  ;;  %v1134_v45 = vadd.f32 0.5, %v1133_v42 }
 0x3ad   :  { %1138 = vrot.lane.b32.xlu1 %v1136_v35, %s2837_s7 }
 0x41f   :  { %v1139_v39 = vpop.permute.xlu1 %1138 }
 0x420   :  { %v1141_v40 = vadd.f32 %v1139_v39, %v1135_v37 }
 0x422   :  { %2561 = vtanh.f32 %v1141_v40 }
 0x42c   :  { %v2562_v46 = vpop.eup %2561 }
 0x42d   :  { %v1143_v47 = vmul.f32 %v2562_v46, %v1134_v45  ;;  %v3161_v46 = vld [vmem:[#allocation9 + $0x8] sm:$0xff] }
 0x42f   :  { %1149 = vrot.lane.b32.xlu1 %v1143_v47, %s2837_s7  ;;  %1145 = vst.msk [vmem:[#allocation3] sm:$0xff] %vm1144_vm1, %v1143_v47  ;;  %v299_v47 = vrot.slane %v3161_v46, %v266_v62 }
 0x4a1   :  { %v1150_v48 = vpop.permute.xlu1 %1149 }
 0x4a2   :  { %2076 = vmatmul.mubr.msk.f32.vlgmr.msra.gmra.mrb[2].mxu0 %vm344_vm0, %v1150_v48 }
 0x4a3   :  { %2366 = vmatpush1.bf16.msra.mxu0 %v3009_v43  ;;  %1416 = vmatprep.mubr.f32.mxu0 %v2836_v0 }
 0x4a4   :  { %2368 = vmatprep.subr.bf16.mxu0 %v3012_v44 }
 0x4a7   :  { %2370 = vmatpush1.bf16.msra.mxu0 %v3017_v49 }
 0x4a8   :  { %2372 = vmatprep.subr.bf16.mxu0 %v3021_v50 }
 0x4ab   :  { %2374 = vmatpush1.bf16.msra.mxu0 %v3024_v55 }
 0x4ac   :  { %2376 = vmatprep.subr.bf16.mxu0 %v3027_v56 }
 0x4af   :  { %2378 = vmatpush1.bf16.msra.mxu0 %v3030_v59 }
 0x4b0   :  { %2396 = vmatprep.subr.bf16.mxu0 %v3007_v38 }
 0x575   :  { %v1219_v54 = vpop.f32.mrb[2].mxu0 }
 0x576   :  { %v2501_v57 = vadd.f32 %v1219_v54, %v283_v52  ;;  %v1221_v60 = vpop.f32.mrb[3].mxu0  ;;  %v303_v54 = vrot.slane %v3161_v46, %v270_v2 }
 0x577   :  { %v2502_v3 = vadd.f32 %v1221_v60, %v287_v58 }
 0x578   :  { %v1226_v1 = vmul.f32 0.5, %v2501_v57 }
 0x579   :  { %v1231_v10 = vmul.f32 0.5, %v2502_v3 }
 0x57a   :  { %2563 = vtanh.f32 %v1226_v1 }
 0x57b   :  { %2565 = vtanh.f32 %v2502_v3 }
 0x57c   :  { %2567 = vtanh.f32 %v1231_v10 }
 0x584   :  { %v2564_v4 = vpop.eup %2563 }
 0x585   :  { %v1228_v5 = vmul.f32 0.5, %v2564_v4  ;;  %v2566_v7 = vpop.eup %2565 }
 0x586   :  { %v2568_v14 = vpop.eup %2567 }
 0x587   :  { %v1229_v6 = vadd.f32 0.5, %v1228_v5  ;;  %v1233_v15 = vmul.f32 0.5, %v2568_v14 }
 0x589   :  { %v1236_v9 = vmul.f32 %v2566_v7, %v1229_v6  ;;  %v1235_v12 = vmul.f32 %v1229_v6, %v1141_v40  ;;  %v1234_v16 = vadd.f32 0.5, %v1233_v15 }
 0x58b   :  { %1238 = vrot.lane.b32.xlu0 %v1236_v9, %s2837_s7 }
 0x5fd   :  { %v1239_v13 = vpop.permute.xlu0 %1238 }
 0x5fe   :  { %v1241_v32 = vadd.f32 %v1239_v13, %v1235_v12 }
 0x600   :  { %2569 = vtanh.f32 %v1241_v32 }
 0x60a   :  { %v2570_v17 = vpop.eup %2569 }
 0x60b   :  { %v1243_v18 = vmul.f32 %v2570_v17, %v1234_v16  ;;  %v307_v16 = vrot.slane %v3161_v46, %v274_v8  ;;  %v1764_v8 = vld [vmem:[#allocation12 + $0x88] sm:$0xff] }
 0x60d   :  { %1245 = vrot.lane.b32.xlu1 %v1243_v18, %s2837_s7 }
 0x67f   :  { %v1246_v19 = vpop.permute.xlu1 %1245 }
 0x680   :  { %1248 = vst.msk [vmem:[#allocation3 + $0x8] sm:$0xff] %vm344_vm0, %v1246_v19  ;;  %2077 = vmatmul.mubr.msk.f32.vlgmr.msra.gmra.mrb[2].mxu1 %vm344_vm0, %v1246_v19 }
 0x681   :  { %2382 = vmatpush1.bf16.msra.mxu1 %v3009_v43  ;;  %1516 = vmatprep.mubr.f32.mxu1 %v2836_v0 }
 0x682   :  { %2384 = vmatprep.subr.bf16.mxu1 %v3012_v44 }
 0x685   :  { %2386 = vmatpush1.bf16.msra.mxu1 %v3017_v49 }
 0x686   :  { %2388 = vmatprep.subr.bf16.mxu1 %v3021_v50 }
 0x689   :  { %2390 = vmatpush1.bf16.msra.mxu1 %v3024_v55 }
 0x68a   :  { %2392 = vmatprep.subr.bf16.mxu1 %v3027_v56 }
 0x68d   :  { %2394 = vmatpush1.bf16.msra.mxu1 %v3030_v59 }
 0x68e   :  { %2412 = vmatprep.subr.bf16.mxu1 %v3007_v38 }
 0x753   :  { %v1319_v11 = vpop.f32.mrb[2].mxu1 }
 0x754   :  { %v2503_v24 = vadd.f32 %v1319_v11, %v291_v21  ;;  %v1321_v26 = vpop.f32.mrb[3].mxu1  ;;  %v1763_v11 = vld [vmem:[#allocation12 + $0x80] sm:$0xff] }
 0x755   :  { %v2504_v28 = vadd.f32 %v1321_v26, %v295_v25 }
 0x756   :  { %v1326_v27 = vmul.f32 0.5, %v2503_v24  ;;  %v2427_v24 = vpack.c.bf16 %v1764_v8, %v1763_v11  ;;  %v1762_v11 = vld [vmem:[#allocation12 + $0x78] sm:$0xff] }
 0x757   :  { %v1331_v34 = vmul.f32 0.5, %v2504_v28 }
 0x758   :  { %2571 = vtanh.f32 %v1326_v27 }
 0x759   :  { %2573 = vtanh.f32 %v2504_v28 }
 0x75a   :  { %2575 = vtanh.f32 %v1331_v34  ;;  %v1748_v34 = vld [vmem:[#allocation12 + $0x8] sm:$0xff] }
 0x762   :  { %v2572_v38 = vpop.eup %2571 }
 0x763   :  { %v1328_v29 = vmul.f32 0.5, %v2572_v38  ;;  %v2574_v31 = vpop.eup %2573 }
 0x764   :  { %v2576_v39 = vpop.eup %2575 }
 0x765   :  { %v1329_v30 = vadd.f32 0.5, %v1328_v29  ;;  %v1333_v63 = vmul.f32 0.5, %v2576_v39 }
 0x767   :  { %v1336_v33 = vmul.f32 %v2574_v31, %v1329_v30  ;;  %v1335_v35 = vmul.f32 %v1329_v30, %v1241_v32  ;;  %v1334_v40 = vadd.f32 0.5, %v1333_v63  ;;  %v1749_v63 = vld [vmem:[#allocation12 + $0x10] sm:$0xff] }
 0x769   :  { %1338 = vrot.lane.b32.xlu0 %v1336_v33, %s2837_s7  ;;  %v1747_v33 = vld [vmem:[#allocation12] sm:$0xff] }
 0x7db   :  { %v1339_v36 = vpop.permute.xlu0 %1338 }
 0x7dc   :  { %v1341_v37 = vadd.f32 %v1339_v36, %v1335_v35  ;;  %v1765_v35 = vld [vmem:[#allocation12 + $0x90] sm:$0xff]  ;;  %v1766_v36 = vld [vmem:[#allocation12 + $0x98] sm:$0xff] }
 0x7dd   :  { %v2431_v39 = vpack.c.bf16 %v1766_v36, %v1765_v35 }
 0x7de   :  { %2577 = vtanh.f32 %v1341_v37 }
 0x7e8   :  { %v2578_v41 = vpop.eup %2577 }
 0x7e9   :  { %v1343_v42 = vmul.f32 %v2578_v41, %v1334_v40  ;;  %v1750_v40 = vld [vmem:[#allocation12 + $0x18] sm:$0xff] }
 0x7eb   :  { %1348 = vrot.lane.b32.xlu1 %v1343_v42, %s2837_s7  ;;  %1344 = vst.msk [vmem:[#allocation3 + $0x8] sm:$0xff] %vm1144_vm1, %v1343_v42  ;;  %v1767_v42 = vld [vmem:[#allocation12 + $0xa0] sm:$0xff] }
 0x85d   :  { %v1349_v45 = vpop.permute.xlu1 %1348 }
 0x85e   :  { %2078 = vmatmul.mubr.msk.f32.vlgmr.msra.gmra.mrb[4].mxu0 %vm344_vm0, %v1349_v45  ;;  %v1768_v45 = vld [vmem:[#allocation12 + $0xa8] sm:$0xff] }
 0x85f   :  { %2398 = vmatpush1.bf16.msra.mxu0 %v3009_v43  ;;  %1615 = vmatprep.mubr.f32.mxu0 %v2836_v0 }
 0x860   :  { %2400 = vmatprep.subr.bf16.mxu0 %v3012_v44 }
 0x863   :  { %2402 = vmatpush1.bf16.msra.mxu0 %v3017_v49 }
 0x864   :  { %2404 = vmatprep.subr.bf16.mxu0 %v3021_v50 }
 0x867   :  { %2406 = vmatpush1.bf16.msra.mxu0 %v3024_v55 }
 0x868   :  { %2408 = vmatprep.subr.bf16.mxu0 %v3027_v56 }
 0x86b   :  { %2410 = vmatpush1.bf16.msra.mxu0 %v3030_v59 }
 0x86c   :  { %2428 = vmatprep.subr.bf16.mxu0 %v2427_v24  ;;  %v1743_v24 = vld [vmem:[#allocation3] sm:$0xff] }
 0x931   :  { %v1418_v48 = vpop.f32.mrb[4].mxu0 }
 0x932   :  { %v2505_v52 = vadd.f32 %v1418_v48, %v299_v47  ;;  %v1420_v57 = vpop.f32.mrb[5].mxu0  ;;  %v1744_v47 = vld [vmem:[#allocation3 + $0x8] sm:$0xff]  ;;  %v2433_v48 = vpack.c.bf16 %v1750_v40, %v1749_v63 }
 0x933   :  { %v2506_v60 = vadd.f32 %v1420_v57, %v303_v54  ;;  %v1751_v54 = vld [vmem:[#allocation12 + $0x20] sm:$0xff]  ;;  %v1752_v57 = vld [vmem:[#allocation12 + $0x28] sm:$0xff] }
 0x934   :  { %v1425_v58 = vmul.f32 0.5, %v2505_v52  ;;  %v2435_v52 = vpack.c.bf16 %v1768_v45, %v1767_v42 }
 0x935   :  { %v1430_v7 = vmul.f32 0.5, %v2506_v60 }
 0x936   :  { %2579 = vtanh.f32 %v1425_v58  ;;  %v1769_v58 = vld [vmem:[#allocation12 + $0xb0] sm:$0xff] }
 0x937   :  { %2581 = vtanh.f32 %v2506_v60  ;;  %v1770_v60 = vld [vmem:[#allocation12 + $0xb8] sm:$0xff] }
 0x938   :  { %2583 = vtanh.f32 %v1430_v7  ;;  %v1772_v7 = vld [vmem:[#allocation12 + $0xc8] sm:$0xff] }
 0x940   :  { %v2580_v1 = vpop.eup %2579 }
 0x941   :  { %v1427_v3 = vmul.f32 0.5, %v2580_v1  ;;  %v2582_v5 = vpop.eup %2581  ;;  %v2437_v1 = vpack.c.bf16 %v1752_v57, %v1751_v54  ;;  %v1795_v57 = vld [vmem:[#allocation12 + $0x180] sm:$0xff] }
 0x942   :  { %v2584_v12 = vpop.eup %2583 }
 0x943   :  { %v1428_v4 = vadd.f32 0.5, %v1427_v3  ;;  %v1432_v2 = vmul.f32 0.5, %v2584_v12  ;;  %v2439_v3 = vpack.c.bf16 %v1770_v60, %v1769_v58  ;;  %v1756_v12 = vld [vmem:[#allocation12 + $0x48] sm:$0xff] }
 0x944   :  { %v1796_v58 = vld [vmem:[#allocation12 + $0x188] sm:$0xff] }
 0x945   :  { %v1435_v6 = vmul.f32 %v2582_v5, %v1428_v4  ;;  %v1434_v62 = vmul.f32 %v1428_v4, %v1341_v37  ;;  %v1433_v13 = vadd.f32 0.5, %v1432_v2  ;;  %v2429_v37 = vpack.c.bf16 %v1748_v34, %v1747_v33  ;;  %v1753_v4 = vld [vmem:[#allocation12 + $0x30] sm:$0xff]  ;;  %v1754_v5 = vld [vmem:[#allocation12 + $0x38] sm:$0xff] }
 0x946   :  { %v1773_v2 = vld [vmem:[#allocation12 + $0xd0] sm:$0xff]  ;;  %v2459_v60 = vpack.c.bf16 %v1796_v58, %v1795_v57  ;;  %v2838_v58 = vmov 0.0|0.0  }
 0x947   :  { %1437 = vrot.lane.b32.xlu0 %v1435_v6, %s2837_s7  ;;  %v1771_v6 = vld [vmem:[#allocation12 + $0xc0] sm:$0xff]  ;;  %v1959_v57 = vld [vmem:[#allocation15 + $0x8] sm:$0xff] }
 0x9b9   :  { %v1438_v9 = vpop.permute.xlu0 %1437 }
 0x9ba   :  { %v1440_v10 = vadd.f32 %v1438_v9, %v1434_v62  ;;  %v2441_v62 = vpack.c.bf16 %v1754_v5, %v1753_v4  ;;  %v2443_v9 = vpack.c.bf16 %v1772_v7, %v1771_v6  ;;  %v1798_v4 = vld [vmem:[#allocation12 + $0x198] sm:$0xff]  ;;  %v1781_v7 = vld [vmem:[#allocation12 + $0x110] sm:$0xff] }
 0x9bc   :  { %2585 = vtanh.f32 %v1440_v10 }
 0x9c6   :  { %v2586_v32 = vpop.eup %2585 }
 0x9c7   :  { %v1442_v14 = vmul.f32 %v2586_v32, %v1433_v13  ;;  %v1774_v13 = vld [vmem:[#allocation12 + $0xd8] sm:$0xff] }
 0x9c9   :  { %1444 = vrot.lane.b32.xlu1 %v1442_v14, %s2837_s7  ;;  %v2447_v14 = vpack.c.bf16 %v1774_v13, %v1773_v2  ;;  %v327_v13 = vrot.slane %v3161_v46, %v294_v22 }
 0xa3b   :  { %v1445_v15 = vpop.permute.xlu1 %1444 }
 0xa3c   :  { %1447 = vst.msk [vmem:[#allocation3 + $0x10] sm:$0xff] %vm344_vm0, %v1445_v15  ;;  %2079 = vmatmul.mubr.msk.f32.vlgmr.msra.gmra.mrb[4].mxu1 %vm344_vm0, %v1445_v15  ;;  %v1757_v15 = vld [vmem:[#allocation12 + $0x50] sm:$0xff] }
 0xa3d   :  { %2414 = vmatpush1.bf16.msra.mxu1 %v3009_v43  ;;  %1715 = vmatprep.mubr.f32.mxu1 %v2836_v0 }
 0xa3e   :  { %2416 = vmatprep.subr.bf16.mxu1 %v3012_v44  ;;  %v311_v44 = vrot.slane %v3161_v46, %v278_v23 }
 0xa41   :  { %2418 = vmatpush1.bf16.msra.mxu1 %v3017_v49 }
 0xa42   :  { %2420 = vmatprep.subr.bf16.mxu1 %v3021_v50 }
 0xa45   :  { %2422 = vmatpush1.bf16.msra.mxu1 %v3024_v55 }
 0xa46   :  { %2424 = vmatprep.subr.bf16.mxu1 %v3027_v56 }
 0xa49   :  { %2426 = vmatpush1.bf16.msra.mxu1 %v3030_v59 }
 0xa4a   :  { %2460 = vmatprep.subr.bf16.mxu1 %v2459_v60 }
 0xb0f   :  { %v1518_v17 = vpop.f32.mrb[4].mxu1 }
 0xb10   :  { %v2507_v43 = vadd.f32 %v1518_v17, %v307_v16  ;;  %v1520_v18 = vpop.f32.mrb[5].mxu1  ;;  %v1758_v16 = vld [vmem:[#allocation12 + $0x58] sm:$0xff]  ;;  %v1775_v17 = vld [vmem:[#allocation12 + $0xe0] sm:$0xff] }
 0xb11   :  { %v2508_v50 = vadd.f32 %v1520_v18, %v311_v44  ;;  %v2449_v44 = vpack.c.bf16 %v1758_v16, %v1757_v15  ;;  %v1799_v16 = vld [vmem:[#allocation12 + $0x1a0] sm:$0xff] }
 0xb12   :  { %v1525_v49 = vmul.f32 0.5, %v2507_v43  ;;  %v1776_v43 = vld [vmem:[#allocation12 + $0xe8] sm:$0xff] }
 0xb13   :  { %v1530_v25 = vmul.f32 0.5, %v2508_v50  ;;  %v2451_v18 = vpack.c.bf16 %v1776_v43, %v1775_v17  ;;  %v1800_v17 = vld [vmem:[#allocation12 + $0x1a8] sm:$0xff] }
 0xb14   :  { %2587 = vtanh.f32 %v1525_v49  ;;  %v1759_v49 = vld [vmem:[#allocation12 + $0x60] sm:$0xff]  ;;  %v2467_v43 = vpack.c.bf16 %v1800_v17, %v1799_v16 }
 0xb15   :  { %2589 = vtanh.f32 %v2508_v50  ;;  %v1760_v50 = vld [vmem:[#allocation12 + $0x68] sm:$0xff] }
 0xb16   :  { %2591 = vtanh.f32 %v1530_v25  ;;  %v315_v25 = vrot.slane %v3161_v46, %v282_v51 }
 0xb1e   :  { %v2588_v55 = vpop.eup %2587 }
 0xb1f   :  { %v1527_v19 = vmul.f32 0.5, %v2588_v55  ;;  %v2590_v21 = vpop.eup %2589  ;;  %v1777_v55 = vld [vmem:[#allocation12 + $0xf0] sm:$0xff] }
 0xb20   :  { %v2592_v28 = vpop.eup %2591 }
 0xb21   :  { %v1528_v56 = vadd.f32 0.5, %v1527_v19  ;;  %v1532_v38 = vmul.f32 0.5, %v2592_v28  ;;  %v1778_v19 = vld [vmem:[#allocation12 + $0xf8] sm:$0xff]  ;;  %v319_v28 = vrot.slane %v3161_v46, %v286_v53 }
 0xb23   :  { %v1535_v59 = vmul.f32 %v2590_v21, %v1528_v56  ;;  %v1534_v26 = vmul.f32 %v1528_v56, %v1440_v10  ;;  %v1533_v29 = vadd.f32 0.5, %v1532_v38  ;;  %v1755_v10 = vld [vmem:[#allocation12 + $0x40] sm:$0xff]  ;;  %v2453_v56 = vpack.c.bf16 %v1760_v50, %v1759_v49  ;;  %v1802_v50 = vld [vmem:[#allocation12 + $0x1b8] sm:$0xff] }
 0xb24   :  { %v2445_v32 = vpack.c.bf16 %v1756_v12, %v1755_v10  ;;  %v2455_v21 = vpack.c.bf16 %v1778_v19, %v1777_v55  ;;  %v323_v10 = vrot.slane %v3161_v46, %v290_v20  ;;  %v1801_v20 = vld [vmem:[#allocation12 + $0x1b0] sm:$0xff]  ;;  %v1803_v46 = vld [vmem:[#allocation12 + $0x1c0] sm:$0xff] }
 0xb25   :  { %1537 = vrot.lane.b32.xlu0 %v1535_v59, %s2837_s7  ;;  %v1761_v59 = vld [vmem:[#allocation12 + $0x70] sm:$0xff]  ;;  %v2471_v55 = vpack.c.bf16 %v1802_v50, %v1801_v20 }
 0xb26   :  { %v2457_v8 = vpack.c.bf16 %v1762_v11, %v1761_v59  ;;  %v1785_v19 = vld [vmem:[#allocation12 + $0x130] sm:$0xff] }
 0xb97   :  { %v1538_v23 = vpop.permute.xlu0 %1537 }
 0xb98   :  { %v3188_v27 = vadd.f32 %v1538_v23, %v1534_v26 }
 0xb9a   :  { %2593 = vtanh.f32 %v3188_v27 }
 0xba4   :  { %v2594_v30 = vpop.eup %2593 }
 0xba5   :  { %v1542_v31 = vmul.f32 %v2594_v30, %v1533_v29 }
 0xba7   :  { %1547 = vrot.lane.b32.xlu1 %v1542_v31, %s2837_s7  ;;  %1543 = vst.msk [vmem:[#allocation3 + $0x10] sm:$0xff] %vm1144_vm1, %v1542_v31 }
 0xc19   :  { %v1548_v41 = vpop.permute.xlu1 %1547 }
 0xc1a   :  { %2080 = vmatmul.mubr.msk.f32.vlgmr.msra.gmra.mrb[6].mxu0 %vm344_vm0, %v1548_v41 }
 0xc1b   :  { %2430 = vmatpush3.bf16.msra.mxu0 %v2429_v37  ;;  %1882 = vmatprep.mubr.f32.mxu0 %v1744_v47 }
 0xc1c   :  { %2432 = vmatprep.subr.bf16.mxu0 %v2431_v39 }
 0xc1f   :  { %2434 = vmatpush3.bf16.msra.mxu0 %v2433_v48 }
 0xc20   :  { %2436 = vmatprep.subr.bf16.mxu0 %v2435_v52 }
 0xc23   :  { %2438 = vmatpush3.bf16.msra.mxu0 %v2437_v1  ;;  %v1780_v1 = vld [vmem:[#allocation12 + $0x108] sm:$0xff] }
 0xc24   :  { %2440 = vmatprep.subr.bf16.mxu0 %v2439_v3  ;;  %v1797_v3 = vld [vmem:[#allocation12 + $0x190] sm:$0xff] }
 0xc25   :  { %v2463_v6 = vpack.c.bf16 %v1798_v4, %v1797_v3 }
 0xc27   :  { %2442 = vmatpush3.bf16.msra.mxu0 %v2441_v62  ;;  %v1782_v62 = vld [vmem:[#allocation12 + $0x118] sm:$0xff] }
 0xc28   :  { %2444 = vmatprep.subr.bf16.mxu0 %v2443_v9  ;;  %v2465_v9 = vpack.c.bf16 %v1782_v62, %v1781_v7 }
 0xc2b   :  { %2446 = vmatpush3.bf16.msra.mxu0 %v2445_v32 }
 0xc2c   :  { %2448 = vmatprep.subr.bf16.mxu0 %v2447_v14 }
 0xc2f   :  { %2450 = vmatpush3.bf16.msra.mxu0 %v2449_v44  ;;  %v1783_v44 = vld [vmem:[#allocation12 + $0x120] sm:$0xff] }
 0xc30   :  { %2452 = vmatprep.subr.bf16.mxu0 %v2451_v18  ;;  %v1784_v18 = vld [vmem:[#allocation12 + $0x128] sm:$0xff] }
 0xc31   :  { %v2469_v49 = vpack.c.bf16 %v1784_v18, %v1783_v44  ;;  %v2083_v44 = vld [vmem:[#allocation16] ss:$0 sm:$0xff] }
 0xc33   :  { %2454 = vmatpush3.bf16.msra.mxu0 %v2453_v56  ;;  %v2473_v56 = vpack.c.bf16 %v1786_v61, %v1785_v19 }
 0xc34   :  { %2456 = vmatprep.subr.bf16.mxu0 %v2455_v21  ;;  %v1804_v21 = vld [vmem:[#allocation12 + $0x1c8] sm:$0xff] }
 0xc35   :  { %v2475_v11 = vpack.c.bf16 %v1804_v21, %v1803_v46 }
 0xc37   :  { %2458 = vmatpush3.bf16.msra.mxu0 %v2457_v8  ;;  %v1787_v8 = vld [vmem:[#allocation12 + $0x140] sm:$0xff] }
 0xc38   :  { %2491 = vmatprep.subr.bf16.mxu0 %v2838_v58 }
 0xc3a   :  { %1883 = vmatmul.mubr.f32.vlgmr.msra.gmra.mrb[8].mxu0 %v1743_v24  ;;  %v1788_v24 = vld [vmem:[#allocation12 + $0x148] sm:$0xff] }
 0xc3b   :  { %2168 = vmatprep.mubr.msk.f32.mxu0 %vm2839_vm2, %v2836_v0 }
 0xced   :  { %v1617_v26 = vpop.f32.mrb[6].mxu0 }
 0xcee   :  { %v2509_v23 = vadd.f32 %v1617_v26, %v315_v25  ;;  %v1619_v38 = vpop.f32.mrb[7].mxu0  ;;  %v2477_v25 = vpack.c.bf16 %v1788_v24, %v1787_v8 }
 0xcef   :  { %v2510_v30 = vadd.f32 %v1619_v38, %v319_v28  ;;  %v1805_v28 = vld [vmem:[#allocation12 + $0x1d0] sm:$0xff]  ;;  %v1806_v38 = vld [vmem:[#allocation12 + $0x1d8] sm:$0xff] }
 0xcf0   :  { %v1624_v29 = vmul.f32 0.5, %v2509_v23 }
 0xcf1   :  { %v1629_v63 = vmul.f32 0.5, %v2510_v30 }
 0xcf2   :  { %2595 = vtanh.f32 %v1624_v29 }
 0xcf3   :  { %2597 = vtanh.f32 %v2510_v30  ;;  %v2479_v30 = vpack.c.bf16 %v1806_v38, %v1805_v28 }
 0xcf4   :  { %2599 = vtanh.f32 %v1629_v63  ;;  %v1792_v63 = vld [vmem:[#allocation12 + $0x168] sm:$0xff] }
 0xcfc   :  { %v2596_v31 = vpop.eup %2595 }
 0xcfd   :  { %v1626_v33 = vmul.f32 0.5, %v2596_v31  ;;  %v2598_v35 = vpop.eup %2597  ;;  %v1789_v31 = vld [vmem:[#allocation12 + $0x150] sm:$0xff] }
 0xcfe   :  { %v2600_v42 = vpop.eup %2599 }
 0xcff   :  { %v1627_v34 = vadd.f32 0.5, %v1626_v33  ;;  %v1631_v45 = vmul.f32 0.5, %v2600_v42  ;;  %v1790_v33 = vld [vmem:[#allocation12 + $0x158] sm:$0xff] }
 0xd00   :  { %v1810_v42 = vld [vmem:[#allocation12 + $0x1f8] sm:$0xff] }
 0xd01   :  { %v1634_v36 = vmul.f32 %v2598_v35, %v1627_v34  ;;  %v1633_v53 = vmul.f32 %v1627_v34, %v3188_v27  ;;  %v1632_v47 = vadd.f32 0.5, %v1631_v45  ;;  %v1779_v27 = vld [vmem:[#allocation12 + $0x100] sm:$0xff]  ;;  %v2481_v34 = vpack.c.bf16 %v1790_v33, %v1789_v31  ;;  %v1793_v45 = vld [vmem:[#allocation12 + $0x170] sm:$0xff] }
 0xd02   :  { %v2461_v5 = vpack.c.bf16 %v1780_v1, %v1779_v27  ;;  %v1807_v35 = vld [vmem:[#allocation12 + $0x1e0] sm:$0xff] }
 0xd03   :  { %1636 = vrot.lane.b32.xlu0 %v1634_v36, %s2837_s7  ;;  %v1808_v36 = vld [vmem:[#allocation12 + $0x1e8] sm:$0xff] }
 0xd0d   :  { %v2117_v37 = vpop.f32.mrb[8].mxu0 }
 0xd0e   :  { %v2118_v51 = vpop.f32.mrb[9].mxu0 }
 0xd0f   :  { %v3201_v39 = vadd.f32 %v2118_v51, %v2117_v37  ;;  %v2483_v37 = vpack.c.bf16 %v1808_v36, %v1807_v35  ;;  %v1791_v51 = vld [vmem:[#allocation12 + $0x160] sm:$0xff] }
 0xd75   :  { %v1637_v40 = vpop.permute.xlu0 %1636 }
 0xd76   :  { %v3204_v41 = vadd.f32 %v1637_v40, %v1633_v53  ;;  %v1809_v53 = vld [vmem:[#allocation12 + $0x1f0] sm:$0xff]  ;;  %v2485_v40 = vpack.c.bf16 %v1792_v63, %v1791_v51 }
 0xd78   :  { %2601 = vtanh.f32 %v3204_v41 }
 0xd82   :  { %v2602_v48 = vpop.eup %2601 }
 0xd83   :  { %v1641_v52 = vmul.f32 %v2602_v48, %v1632_v47  ;;  %v1794_v47 = vld [vmem:[#allocation12 + $0x178] sm:$0xff]  ;;  %v2487_v48 = vpack.c.bf16 %v1810_v42, %v1809_v53 }
 0xd85   :  { %1643 = vrot.lane.b32.xlu1 %v1641_v52, %s2837_s7  ;;  %v2489_v52 = vpack.c.bf16 %v1794_v47, %v1793_v45 }
 0xdf7   :  { %v1644_v54 = vpop.permute.xlu1 %1643 }
 0xdf8   :  { %1646 = vst.msk [vmem:[#allocation3 + $0x18] sm:$0xff] %vm344_vm0, %v1644_v54  ;;  %2081 = vmatmul.mubr.msk.f32.vlgmr.msra.gmra.mrb[6].mxu1 %vm344_vm0, %v1644_v54  ;;  %v1958_v54 = vld [vmem:[#allocation15] sm:$0xff] }
 0xdf9   :  { %2462 = vmatpush3.bf16.msra.mxu1 %v2461_v5  ;;  %v2492_v27 = vpack.c.bf16 %v1959_v57, %v1958_v54 }
 0xdfa   :  { %2464 = vmatprep.subr.bf16.mxu1 %v2463_v6 }
 0xdfb   :  { %2493 = vmatpush3.bf16.msra.mxu0 %v2492_v27 }
 0xdfc   :  { %2494 = vmatprep.subr.bf16.mxu0 %v2838_v58 }
 0xdfd   :  { %2466 = vmatpush3.bf16.msra.mxu1 %v2465_v9 }
 0xdfe   :  { %2468 = vmatprep.subr.bf16.mxu1 %v2467_v43 }
 0xe01   :  { %2470 = vmatpush3.bf16.msra.mxu1 %v2469_v49 }
 0xe02   :  { %2472 = vmatprep.subr.bf16.mxu1 %v2471_v55 }
 0xe05   :  { %2474 = vmatpush3.bf16.msra.mxu1 %v2473_v56 }
 0xe06   :  { %2476 = vmatprep.subr.bf16.mxu1 %v2475_v11 }
 0xe09   :  { %2478 = vmatpush3.bf16.msra.mxu1 %v2477_v25 }
 0xe0a   :  { %2480 = vmatprep.subr.bf16.mxu1 %v2479_v30 }
 0xe0d   :  { %2482 = vmatpush3.bf16.msra.mxu1 %v2481_v34 }
 0xe0e   :  { %2484 = vmatprep.subr.bf16.mxu1 %v2483_v37 }
 0xe11   :  { %2486 = vmatpush3.bf16.msra.mxu1 %v2485_v40 }
 0xe12   :  { %2488 = vmatprep.subr.bf16.mxu1 %v2487_v48 }
 0xe15   :  { %2490 = vmatpush3.bf16.msra.mxu1 %v2489_v52 }
 0xecb   :  { %v1717_v12 = vpop.f32.mrb[6].mxu1 }
 0xecc   :  { %v2511_v2 = vadd.f32 %v1717_v12, %v323_v10  ;;  %v1719_v32 = vpop.f32.mrb[7].mxu1  ;;  %v1745_v12 = vld [vmem:[#allocation3 + $0x10] sm:$0xff] }
 0xecd   :  { %v2512_v15 = vadd.f32 %v1719_v32, %v327_v13  ;;  %v1961_v13 = vld [vmem:[#allocation15 + $0x18] sm:$0xff] }
 0xece   :  { %v1724_v14 = vmul.f32 0.5, %v2511_v2  ;;  %v1960_v2 = vld [vmem:[#allocation15 + $0x10] sm:$0xff] }
 0xecf   :  { %v1729_v60 = vmul.f32 0.5, %v2512_v15  ;;  %v2495_v32 = vpack.c.bf16 %v1961_v13, %v1960_v2 }
 0xed0   :  { %2603 = vtanh.f32 %v1724_v14 }
 0xed1   :  { %2605 = vtanh.f32 %v2512_v15  ;;  %2496 = vmatpush3.bf16.msra.mxu0 %v2495_v32 }
 0xed2   :  { %2607 = vtanh.f32 %v1729_v60 }
 0xeda   :  { %v2604_v22 = vpop.eup %2603 }
 0xedb   :  { %v1726_v59 = vmul.f32 0.5, %v2604_v22  ;;  %v2606_v23 = vpop.eup %2605 }
 0xedc   :  { %v2608_v5 = vpop.eup %2607 }
 0xedd   :  { %v1727_v26 = vadd.f32 0.5, %v1726_v59  ;;  %v1731_v6 = vmul.f32 0.5, %v2608_v5 }
 0xedf   :  { %v1734_v29 = vmul.f32 %v2606_v23, %v1727_v26  ;;  %v1733_v1 = vmul.f32 %v1727_v26, %v3204_v41  ;;  %v1732_v7 = vadd.f32 0.5, %v1731_v6  ;;  %v2082_v41 = vld [vmem:[#allocation13] ss:$0 sm:$0xff] }
 0xee0   :  { %v1885_v16 = vadd.f32 %v3201_v39, %v2082_v41 }
 0xee1   :  { %1736 = vrot.lane.b32.xlu0 %v1734_v29, %s2837_s7 }
 0xf53   :  { %v1737_v3 = vpop.permute.xlu0 %1736 }
 0xf54   :  { %v1739_v4 = vadd.f32 %v1737_v3, %v1733_v1 }
 0xf56   :  { %2609 = vtanh.f32 %v1739_v4 }
 0xf60   :  { %v2610_v62 = vpop.eup %2609 }
 0xf61   :  { %v1741_v9 = vmul.f32 %v2610_v62, %v1732_v7 }
 0xf63   :  { %1742 = vst.msk [vmem:[#allocation3 + $0x18] sm:$0xff] %vm1144_vm1, %v1741_v9 }
 0xf6a   :  { %v1746_v10 = vld [vmem:[#allocation3 + $0x18] sm:$0xff] }
 0xf6b   :  { %1952 = vmatprep.mubr.f32.mxu1 %v1746_v10 }
 0xf6c   :  { %1953 = vmatmul.mubr.f32.vlgmr.msra.gmra.mrb[8].mxu1 %v1745_v12 }
0x103f   :  { %v2152_v14 = vpop.f32.mrb[8].mxu1 }
0x1040   :  { %v2153_v15 = vpop.f32.mrb[9].mxu1 }
0x1041   :  { %v2154_v17 = vadd.f32 %v2153_v15, %v2152_v14 }
0x1043   :  { %v1955_v43 = vadd.f32 %v2154_v17, %v1885_v16 }
0x1045   :  { %2169 = vmatmul.mubr.msk.f32.vlgmr.msra.gmra.mrb[10].mxu0 %vm1969_vm3, %v1955_v43 }
0x1118   :  { %v2039_v18 = vpop.f32.mrb[10].mxu0 }
0x1119   :  { %v2040_v49 = vadd.f32 %v2083_v44, %v2039_v18  ;;  %v2170_v20 = vpop.f32.mrb[11].mxu0 }
0x111b   :  { %v2043_v50 = vmul.f32 0.5, %v2040_v49 }
0x111d   :  { %2611 = vtanh.f32 %v2043_v50 }
0x1127   :  { %v2612_v55 = vpop.eup %2611 }
0x1128   :  { %v2045_v19 = vmul.f32 0.5, %v2612_v55 }
0x112a   :  { %v2046_v0 = vadd.f32 0.5, %v2045_v19 }
0x112c   :  { %2047 = vst [vmem:[#allocation18] sm:$0xff] %v2046_v0 }
0x112d   :  { %2800 = shalt.err (!%p2797_p12)
}
0x112e   :  { %s2801_s11 = scalar_lea.hbm %s3241_s8, 128 }
0x112f   :  { %p2802_p13 = scmp.ne.s32.totalorder %s3241_s8, %s2801_s11  ;;  %p2805_p0 = scmp.lt.u32.totalorder %s2801_s11, %s3241_s8 }
0x1131   :  { %p2807_p1 = pnand %p2805_p0, %p2802_p13 }
0x1133   :  { %2810 = shalt.err (!%p2807_p1)
}
0x1134   :  { %2057 = dma.vmem_to_hbm [thread:$0]  %s2055_s2, 128, %s3241_s8, [#allocation6]  }
0x1135   :  { %2821 = dma.done.wait [#allocation6], 128  }
0x1136   :  { %2822 = vsyncadd [#allocation6], 4294967168 }
0x1137   :  { %2061 = vsyncpa [#allocation5], 1 }
0x1138   :  { %2062 = vsyncpa [#allocation8], 1 }
0x1139   :  { %2063 = vsyncpa [#allocation11], 1 }
0x113a   :  { %2064 = vsyncpa [#allocation14], 1 }
0x113b   :  { %2065 = vsyncpa [#allocation17], 1 }
0x113c   :  { %2066 = vsyncpa [#allocation6], 1 }

</bundles_post_ra>
